<compile_context>
chip_gen: v7x
topology: tpu7x:2x2x1
jax: 0.10.0
libtpu: 0.0.40
codegen_flags: <defaults>
</compile_context>

<pallas_src>
import functools

import jax
import jax.numpy as jnp
from jax.experimental import pallas as pl
from jax.experimental.pallas import tpu as pltpu


# ---------------------------------------------------------------------------
# small helpers
# ---------------------------------------------------------------------------
def _silu(a):
    # a * sigmoid(a); sigmoid via tanh -> EUP slot, no inf intermediates.
    return a * (0.5 * (jnp.tanh(0.5 * a) + 1.0))


def _mxu_dot(a, b, dims, split_a=True, split_b=True):
    """f32 matmul on the MXU with hi/lo (bf16) operand splitting so the result
    is near-exact regardless of how the backend implements f32 passes.
    Exact 0/1 operands (selection matrices) do not need splitting."""
    dot = lambda u, v: jax.lax.dot_general(
        u, v, (dims, ((), ())), preferred_element_type=jnp.float32)
    a_hi = a.astype(jnp.bfloat16).astype(jnp.float32) if split_a else a
    b_hi = b.astype(jnp.bfloat16).astype(jnp.float32) if split_b else b
    out = dot(a_hi, b_hi)
    if split_a:
        out = out + dot(a - a_hi, b_hi)
    if split_b:
        out = out + dot(a_hi, b - b_hi)
    return out


def _expand_x(x, rmat):
    # xb[t, d*O + o] = x[t, d]   (rmat is an exact 0/1 matrix)
    return _mxu_dot(x, rmat, ((1,), (0,)), split_a=True, split_b=False)


def _contract_flat(xb, w_flat, smat):
    # v[t, o] = sum_d xb[t, d*O+o] * w_flat[t, d*O+o]   (smat exact 0/1)
    return _mxu_dot(xb * w_flat, smat, ((1,), (0,)), split_a=True, split_b=False)


def _attn_diag_project(vg, z, gamma, beta, wo, bo):
    """q/k affine, softmax DIAGONAL, gating, output projection.
    vg, z: (T, O);  gamma/beta: (2, O);  wo: (N, O);  bo: (N, 1) -> (N, T)."""
    q = z * gamma[0:1, :] + beta[0:1, :]
    k = z * gamma[1:2, :] + beta[1:2, :]
    inv_sqrt = 1.0 / (float(q.shape[-1]) ** 0.5)

    # Only row statistics of sim = q k^T / sqrt(O) are needed.
    sim = jax.lax.dot_general(q, k, (((1,), (1,)), ((), ())),
                              preferred_element_type=jnp.float32) * inv_sqrt
    row_max = jnp.max(sim, axis=-1, keepdims=True)
    row_sum = jnp.sum(jnp.exp(sim - row_max), axis=-1, keepdims=True)

    diag_logit = jnp.sum(q * k, axis=-1, keepdims=True) * inv_sqrt
    diag = jnp.exp(diag_logit - row_max) / row_sum          # (T, 1)

    vv = diag * vg                                           # (T, O)
    # out_t[n, t] = sum_o wo[n, o] * vv[t, o]   (lane-dense over T)
    out_t = _mxu_dot(wo, vv, ((1,), (1,)), split_a=True, split_b=True)
    return out_t + bo


# ---------------------------------------------------------------------------
# kernels
# ---------------------------------------------------------------------------
def _gau_fused_kernel(x_ref, wv_ref, wu_ref, wz_ref, rmat_ref, smat_ref,
                      gamma_ref, beta_ref, wo_ref, bo_ref, out_ref):
    xb = _expand_x(x_ref[0], rmat_ref[...])
    smat = smat_ref[...]
    v = _silu(_contract_flat(xb, wv_ref[0], smat))
    g = _silu(_contract_flat(xb, wu_ref[0], smat))
    z = _silu(_contract_flat(xb, wz_ref[0], smat))
    out_t = _attn_diag_project(v * g, z, gamma_ref[...], beta_ref[...],
                               wo_ref[...], bo_ref[...])
    out_ref[0] = out_t.astype(out_ref.dtype)


def _gau_stream_kernel(x_ref, wv_ref, wu_ref, wz_ref, rmat_ref, smat_ref,
                       az_ref):
    xb = _expand_x(x_ref[0], rmat_ref[...])
    smat = smat_ref[...]
    v = _silu(_contract_flat(xb, wv_ref[0], smat))
    g = _silu(_contract_flat(xb, wu_ref[0], smat))
    z = _silu(_contract_flat(xb, wz_ref[0], smat))
    # packed (vg | z) intermediate: one lane-dense output stream per tile.
    az_ref[0] = jnp.concatenate([v * g, z], axis=-1).astype(az_ref.dtype)


def _gau_attn_kernel(az_ref, gamma_ref, beta_ref, wo_ref, bo_ref, out_ref, *,
                     o_dim):
    az = az_ref[0]
    out_t = _attn_diag_project(az[:, :o_dim], az[:, o_dim:],
                               gamma_ref[...], beta_ref[...],
                               wo_ref[...], bo_ref[...])
    out_ref[0] = out_t.astype(out_ref.dtype)


# ---------------------------------------------------------------------------
# padding-aware, generation-aware tiling
# ---------------------------------------------------------------------------
def _round_up(n, m):
    return ((n + m - 1) // m) * m


@functools.lru_cache(maxsize=None)
def _vmem_capacity_bytes():
    try:
        return int(pltpu.get_tpu_info().vmem_capacity_bytes)
    except Exception:          # conservative fallback (v7x-sized)
        return 64 * 2**20


def _budgets():
    cap = _vmem_capacity_bytes()
    if cap <= 64 * 2**20:                 # v7x-class: 64 MiB per TensorCore
        return 24 * 2**20, 32 * 2**20     # (stream budget, vmem_limit cap)
    return 56 * 2**20, 96 * 2**20         # v5e / v6e: 128 MiB


def _stream_bytes_per_row(d_model, o_dim, itemsize=4):
    # double-buffered: 3 flat weight rows + x row + packed output row,
    # lane-padded to the real VMEM footprint.
    per_row = (3 * _round_up(d_model * o_dim, 128) + _round_up(d_model, 128)
               + _round_up(2 * o_dim, 128)) * itemsize
    return 2 * per_row


def _fused_vmem_bytes(t, d_model, o_dim):
    rows = _round_up(t, 8)
    stream = _stream_bytes_per_row(d_model, o_dim) * rows
    temps = (rows * _round_up(t, 128)                        # (T, T) sim
             + 2 * rows * _round_up(d_model * o_dim, 128)    # xb + one product
             ) * 4
    return stream + temps


def _pick_t_tile(t, d_model, o_dim, budget):
    per_row = _stream_bytes_per_row(d_model, o_dim)
    max_rows = max(8, min(t, budget // per_row))
    best = 0
    for cand in range(8, int(max_rows) + 1, 8):
        if t % cand == 0:
            best = cand
    if best:
        return best
    return (int(max_rows) // 8) * 8       # ragged last tile handled by Pallas


# ---------------------------------------------------------------------------
# wrapper
# ---------------------------------------------------------------------------
@jax.jit
def gau_forward(x, w_u, w_v, w_z, gamma, beta, w_out_nt, b_out):
    """
    x        : (B, T, D)              float32
    w_u/v/z  : (B, T, D*O)            float32 (flat, original layout)
    gamma    : (2, O)    beta : (2, O)
    w_out_nt : (N, O)    b_out: (N,)  (PyTorch nn.Linear layout)
    returns  : (B, 1, N, T)
    """
    B, T, D = x.shape
    O = gamma.shape[-1]
    N = w_out_nt.shape[0]
    DO = D * O
    assert w_u.shape == (B, T, DO) and w_v.shape == (B, T, DO)
    assert w_z.shape == (B, T, DO)

    f32 = jnp.float32
    x = x.astype(f32)
    w_u, w_v, w_z = w_u.astype(f32), w_v.astype(f32), w_z.astype(f32)
    gamma, beta = gamma.astype(f32), beta.astype(f32)
    wo = w_out_nt.astype(f32)
    bo = b_out.reshape(N, 1).astype(f32)

    # Constant 0/1 selection matrices for the flat-layout contraction.
    j = jnp.arange(DO, dtype=jnp.int32)
    rmat = (j[None, :] // O ==
            jnp.arange(D, dtype=jnp.int32)[:, None]).astype(f32)      # (D, DO)
    smat = (j[:, None] % O ==
            jnp.arange(O, dtype=jnp.int32)[None, :]).astype(f32)      # (DO, O)

    stream_budget, vmem_cap = _budgets()

    if _fused_vmem_bytes(T, D, O) <= stream_budget:
        # ---- single fused kernel: no vg/z HBM round trip, one launch -------
        vmem_limit = int(min(vmem_cap,
                             max(16 * 2**20, 2 * _fused_vmem_bytes(T, D, O))))
        out_nt = pl.pallas_call(
            _gau_fused_kernel,
            out_shape=jax.ShapeDtypeStruct((B, N, T), f32),
            grid=(B,),                    # B >= 2 keeps both v7x cores busy
            in_specs=[
                pl.BlockSpec((1, T, D), lambda b: (b, 0, 0)),
                pl.BlockSpec((1, T, DO), lambda b: (b, 0, 0)),
                pl.BlockSpec((1, T, DO), lambda b: (b, 0, 0)),
                pl.BlockSpec((1, T, DO), lambda b: (b, 0, 0)),
                pl.BlockSpec((D, DO), lambda b: (0, 0)),
                pl.BlockSpec((DO, O), lambda b: (0, 0)),
                pl.BlockSpec((2, O), lambda b: (0, 0)),
                pl.BlockSpec((2, O), lambda b: (0, 0)),
                pl.BlockSpec((N, O), lambda b: (0, 0)),
                pl.BlockSpec((N, 1), lambda b: (0, 0)),
            ],
            out_specs=pl.BlockSpec((1, N, T), lambda b: (b, 0, 0)),
            compiler_params=pltpu.CompilerParams(
                dimension_semantics=("parallel",),
                vmem_limit_bytes=vmem_limit),
        )(x, w_v, w_u, w_z, rmat, smat, gamma, beta, wo, bo)
        return out_nt[:, None, :, :]

    # ---- large T: streamed contraction kernel + per-batch attention --------
    tT = _pick_t_tile(T, D, O, stream_budget)
    n_t = pl.cdiv(T, tT)
    est_a = _stream_bytes_per_row(D, O) * tT + 2 * tT * _round_up(DO, 128) * 4
    vmem_a = int(min(vmem_cap, max(16 * 2**20, est_a + est_a // 2)))

    az = pl.pallas_call(
        _gau_stream_kernel,
        out_shape=jax.ShapeDtypeStruct((B, T, 2 * O), f32),
        grid=(B, n_t),
        in_specs=[
            pl.BlockSpec((1, tT, D), lambda b, t: (b, t, 0)),
            pl.BlockSpec((1, tT, DO), lambda b, t: (b, t, 0)),
            pl.BlockSpec((1, tT, DO), lambda b, t: (b, t, 0)),
            pl.BlockSpec((1, tT, DO), lambda b, t: (b, t, 0)),
            pl.BlockSpec((D, DO), lambda b, t: (0, 0)),
            pl.BlockSpec((DO, O), lambda b, t: (0, 0)),
        ],
        out_specs=pl.BlockSpec((1, tT, 2 * O), lambda b, t: (b, t, 0)),
        compiler_params=pltpu.CompilerParams(
            dimension_semantics=("parallel", "parallel"),
            vmem_limit_bytes=vmem_a),
    )(x, w_v, w_u, w_z, rmat, smat)

    # Per-batch attention over the packed intermediate.  Work per grid step is
    # O(T^2) here (this path only triggers for large T), so per-step overhead
    # is amortized and megacore still splits the B axis.
    est_b = (2 * 2 * _round_up(T, 8) * _round_up(2 * O, 128)
             + _round_up(T, 8) * _round_up(T, 128)) * 4
    if est_b > vmem_cap:
        # TODO(synk): flash-style key tiling of the (T, T) row statistics.
        raise NotImplementedError(
            "T too large for single-pass softmax row statistics in VMEM")
    vmem_b = int(min(vmem_cap, max(16 * 2**20, 2 * est_b)))
    out_nt = pl.pallas_call(
        functools.partial(_gau_attn_kernel, o_dim=O),
        out_shape=jax.ShapeDtypeStruct((B, N, T), f32),
        grid=(B,),
        in_specs=[
            pl.BlockSpec((1, T, 2 * O), lambda b: (b, 0, 0)),
            pl.BlockSpec((2, O), lambda b: (0, 0)),
            pl.BlockSpec((2, O), lambda b: (0, 0)),
            pl.BlockSpec((N, O), lambda b: (0, 0)),
            pl.BlockSpec((N, 1), lambda b: (0, 0)),
        ],
        out_specs=pl.BlockSpec((1, N, T), lambda b: (b, 0, 0)),
        compiler_params=pltpu.CompilerParams(
            dimension_semantics=("parallel",),
            vmem_limit_bytes=vmem_b),
    )(az, gamma, beta, wo, bo)
    return out_nt[:, None, :, :]


# ---------------------------------------------------------------------------
# pure-JAX reference (mirrors the PyTorch module; high-precision einsums)
# ---------------------------------------------------------------------------
def gau_reference(x, w_u, w_v, w_z, gamma, beta, w_out_nt, b_out):
    B, T, D = x.shape
    O = gamma.shape[-1]
    hp = jax.lax.Precision.HIGHEST
    wu_r = w_u.reshape(B, T, D, O)
    wv_r = w_v.reshape(B, T, D, O)
    wz_r = w_z.reshape(B, T, D, O)
    v = jnp.einsum('btd,btdo->bto', x, wv_r, precision=hp)
    gate = jnp.einsum('btd,btdo->bto', x, wu_r, precision=hp)
    z = jnp.einsum('btd,btdo->bto', x, wz_r, precision=hp)
    v, gate, z = jax.nn.silu(v), jax.nn.silu(gate), jax.nn.silu(z)
    qk = z[:, :, None, :] * gamma[None, None, :, :] + beta[None, None, :, :]
    q, k = qk[:, :, 0, :], qk[:, :, 1, :]
    sim = jnp.einsum('bio,bjo->bij', q, k, precision=hp) / jnp.sqrt(
        jnp.float32(O))
    A = jax.nn.softmax(sim, axis=-1)
    diag = jnp.diagonal(A, axis1=-2, axis2=-1)               # (B, T)
    V = diag[:, :, None] * v * gate
    out = jnp.einsum('bto,no->btn', V, w_out_nt,
                     precision=hp) + b_out[None, None, :]
    return jnp.transpose(out, (0, 2, 1))[:, None, :, :]


if __name__ == "__main__":
    B, T, D = 2, 8, 16          # batch, num_of_hour (seq), d_model
    O = 32                      # time_features_out
    N = 4                       # nodes

    key = jax.random.PRNGKey(0)
    ks = jax.random.split(key, 8)
    x = jax.random.normal(ks[0], (B, T, D), dtype=jnp.float32)
    w_u = jax.random.normal(ks[1], (B, T, D * O), dtype=jnp.float32) * 0.1
    w_v = jax.random.normal(ks[2], (B, T, D * O), dtype=jnp.float32) * 0.1
    w_z = jax.random.normal(ks[3], (B, T, D * O), dtype=jnp.float32) * 0.1

    # Parameters matching the module __init__ shapes (gamma std=0.02).
    gamma = 0.02 * jax.random.normal(ks[4], (2, O), dtype=jnp.float32)
    beta = 0.01 * jax.random.normal(ks[5], (2, O), dtype=jnp.float32)
    # nn.Linear(O, N): weight (N, O), bias (N,)
    w_out = jax.random.normal(ks[6], (N, O), dtype=jnp.float32) / jnp.sqrt(
        jnp.float32(O))
    b_out = jax.random.normal(ks[7], (N,), dtype=jnp.float32) * 0.01

    out = jax.block_until_ready(
        gau_forward(x, w_u, w_v, w_z, gamma, beta, w_out, b_out))
    ref = gau_reference(x, w_u, w_v, w_z, gamma, beta, w_out, b_out)

    assert out.shape == (B, 1, N, T), out.shape
    max_err = float(jnp.max(jnp.abs(out - ref)))
    assert max_err < 1e-4, f"max abs error {max_err}"
    print("KERNEL_OK")
</pallas_src>

<mosaic_0001>
module attributes {stable_mosaic.version = 11 : i64} {
  func.func @_gau_fused_kernel(%arg0: i32, %arg1: memref<1x8x16xf32, #tpu.memory_space<vmem>>, %arg2: memref<1x8x512xf32, #tpu.memory_space<vmem>>, %arg3: memref<1x8x512xf32, #tpu.memory_space<vmem>>, %arg4: memref<1x8x512xf32, #tpu.memory_space<vmem>>, %arg5: memref<16x512xf32, #tpu.memory_space<vmem>>, %arg6: memref<512x32xf32, #tpu.memory_space<vmem>>, %arg7: memref<2x32xf32, #tpu.memory_space<vmem>>, %arg8: memref<2x32xf32, #tpu.memory_space<vmem>>, %arg9: memref<4x32xf32, #tpu.memory_space<vmem>>, %arg10: memref<4x1xf32, #tpu.memory_space<vmem>>, %arg11: memref<1x4x8xf32, #tpu.memory_space<vmem>>) attributes {dimension_semantics = [#tpu.dimension_semantics<parallel>], iteration_bounds = array<i64: 2>, scalar_prefetch = 0 : i64, scratch_operands = 0 : i64, tpu.core_type = #tpu.core_type<tc>, window_params = [{transform_indices = @transform_0, window_bounds = array<i64: 1, 8, 16>}, {transform_indices = @transform_1, window_bounds = array<i64: 1, 8, 512>}, {transform_indices = @transform_2, window_bounds = array<i64: 1, 8, 512>}, {transform_indices = @transform_3, window_bounds = array<i64: 1, 8, 512>}, {pipeline_mode = #tpu.pipeline_mode<synchronous>, transform_indices = @transform_4, window_bounds = array<i64: 16, 512>}, {pipeline_mode = #tpu.pipeline_mode<synchronous>, transform_indices = @transform_5, window_bounds = array<i64: 512, 32>}, {pipeline_mode = #tpu.pipeline_mode<synchronous>, transform_indices = @transform_6, window_bounds = array<i64: 2, 32>}, {pipeline_mode = #tpu.pipeline_mode<synchronous>, transform_indices = @transform_7, window_bounds = array<i64: 2, 32>}, {pipeline_mode = #tpu.pipeline_mode<synchronous>, transform_indices = @transform_8, window_bounds = array<i64: 4, 32>}, {pipeline_mode = #tpu.pipeline_mode<synchronous>, transform_indices = @transform_9, window_bounds = array<i64: 4, 1>}, {transform_indices = @transform_10, window_bounds = array<i64: 1, 4, 8>}]} {
    %c0 = arith.constant 0 : index
    %c0_0 = arith.constant 0 : index
    %c0_1 = arith.constant 0 : index
    %0 = vector.load %arg1[%c0, %c0_0, %c0_1] : memref<1x8x16xf32, #tpu.memory_space<vmem>>, vector<1x8x16xf32>
    %1 = vector.shape_cast %0 : vector<1x8x16xf32> to vector<8x16xf32>
    %c0_2 = arith.constant 0 : index
    %c0_3 = arith.constant 0 : index
    %2 = vector.load %arg5[%c0_2, %c0_3] : memref<16x512xf32, #tpu.memory_space<vmem>>, vector<16x512xf32>
    %3 = arith.truncf %1 : vector<8x16xf32> to vector<8x16xbf16>
    %4 = arith.extf %3 : vector<8x16xbf16> to vector<8x16xf32>
    %cst = arith.constant dense<0.000000e+00> : vector<8x512xf32>
    %5 = tpu.matmul %4, %2, %cst {dimension_numbers = #tpu.dot_dimension_numbers<[1], [0], [0], [1], [0, 0, 1, 1], [], []>} : vector<8x16xf32>, vector<16x512xf32>, vector<8x512xf32> -> vector<8x512xf32>
    %6 = arith.subf %1, %4 : vector<8x16xf32>
    %cst_4 = arith.constant dense<0.000000e+00> : vector<8x512xf32>
    %7 = tpu.matmul %6, %2, %cst_4 {dimension_numbers = #tpu.dot_dimension_numbers<[1], [0], [0], [1], [0, 0, 1, 1], [], []>} : vector<8x16xf32>, vector<16x512xf32>, vector<8x512xf32> -> vector<8x512xf32>
    %8 = arith.addf %5, %7 : vector<8x512xf32>
    %c0_5 = arith.constant 0 : index
    %c0_6 = arith.constant 0 : index
    %9 = vector.load %arg6[%c0_5, %c0_6] : memref<512x32xf32, #tpu.memory_space<vmem>>, vector<512x32xf32>
    %c0_7 = arith.constant 0 : index
    %c0_8 = arith.constant 0 : index
    %c0_9 = arith.constant 0 : index
    %10 = vector.load %arg2[%c0_7, %c0_8, %c0_9] : memref<1x8x512xf32, #tpu.memory_space<vmem>>, vector<1x8x512xf32>
    %11 = vector.shape_cast %10 : vector<1x8x512xf32> to vector<8x512xf32>
    %12 = arith.mulf %8, %11 : vector<8x512xf32>
    %13 = arith.truncf %12 : vector<8x512xf32> to vector<8x512xbf16>
    %14 = arith.extf %13 : vector<8x512xbf16> to vector<8x512xf32>
    %cst_10 = arith.constant dense<0.000000e+00> : vector<8x32xf32>
    %15 = tpu.matmul %14, %9, %cst_10 {dimension_numbers = #tpu.dot_dimension_numbers<[1], [0], [0], [1], [0, 0, 1, 1], [], []>} : vector<8x512xf32>, vector<512x32xf32>, vector<8x32xf32> -> vector<8x32xf32>
    %16 = arith.subf %12, %14 : vector<8x512xf32>
    %cst_11 = arith.constant dense<0.000000e+00> : vector<8x32xf32>
    %17 = tpu.matmul %16, %9, %cst_11 {dimension_numbers = #tpu.dot_dimension_numbers<[1], [0], [0], [1], [0, 0, 1, 1], [], []>} : vector<8x512xf32>, vector<512x32xf32>, vector<8x32xf32> -> vector<8x32xf32>
    %18 = arith.addf %15, %17 : vector<8x32xf32>
    %cst_12 = arith.constant 5.000000e-01 : f32
    %19 = vector.broadcast %cst_12 : f32 to vector<8x32xf32>
    %20 = arith.mulf %19, %18 : vector<8x32xf32>
    %21 = math.tanh %20 : vector<8x32xf32>
    %cst_13 = arith.constant 1.000000e+00 : f32
    %22 = vector.broadcast %cst_13 : f32 to vector<8x32xf32>
    %23 = arith.addf %21, %22 : vector<8x32xf32>
    %cst_14 = arith.constant 5.000000e-01 : f32
    %24 = vector.broadcast %cst_14 : f32 to vector<8x32xf32>
    %25 = arith.mulf %24, %23 : vector<8x32xf32>
    %26 = arith.mulf %18, %25 : vector<8x32xf32>
    %c0_15 = arith.constant 0 : index
    %c0_16 = arith.constant 0 : index
    %c0_17 = arith.constant 0 : index
    %27 = vector.load %arg3[%c0_15, %c0_16, %c0_17] : memref<1x8x512xf32, #tpu.memory_space<vmem>>, vector<1x8x512xf32>
    %28 = vector.shape_cast %27 : vector<1x8x512xf32> to vector<8x512xf32>
    %29 = arith.mulf %8, %28 : vector<8x512xf32>
    %30 = arith.truncf %29 : vector<8x512xf32> to vector<8x512xbf16>
    %31 = arith.extf %30 : vector<8x512xbf16> to vector<8x512xf32>
    %cst_18 = arith.constant dense<0.000000e+00> : vector<8x32xf32>
    %32 = tpu.matmul %31, %9, %cst_18 {dimension_numbers = #tpu.dot_dimension_numbers<[1], [0], [0], [1], [0, 0, 1, 1], [], []>} : vector<8x512xf32>, vector<512x32xf32>, vector<8x32xf32> -> vector<8x32xf32>
    %33 = arith.subf %29, %31 : vector<8x512xf32>
    %cst_19 = arith.constant dense<0.000000e+00> : vector<8x32xf32>
    %34 = tpu.matmul %33, %9, %cst_19 {dimension_numbers = #tpu.dot_dimension_numbers<[1], [0], [0], [1], [0, 0, 1, 1], [], []>} : vector<8x512xf32>, vector<512x32xf32>, vector<8x32xf32> -> vector<8x32xf32>
    %35 = arith.addf %32, %34 : vector<8x32xf32>
    %cst_20 = arith.constant 5.000000e-01 : f32
    %36 = vector.broadcast %cst_20 : f32 to vector<8x32xf32>
    %37 = arith.mulf %36, %35 : vector<8x32xf32>
    %38 = math.tanh %37 : vector<8x32xf32>
    %cst_21 = arith.constant 1.000000e+00 : f32
    %39 = vector.broadcast %cst_21 : f32 to vector<8x32xf32>
    %40 = arith.addf %38, %39 : vector<8x32xf32>
    %cst_22 = arith.constant 5.000000e-01 : f32
    %41 = vector.broadcast %cst_22 : f32 to vector<8x32xf32>
    %42 = arith.mulf %41, %40 : vector<8x32xf32>
    %43 = arith.mulf %35, %42 : vector<8x32xf32>
    %c0_23 = arith.constant 0 : index
    %c0_24 = arith.constant 0 : index
    %c0_25 = arith.constant 0 : index
    %44 = vector.load %arg4[%c0_23, %c0_24, %c0_25] : memref<1x8x512xf32, #tpu.memory_space<vmem>>, vector<1x8x512xf32>
    %45 = vector.shape_cast %44 : vector<1x8x512xf32> to vector<8x512xf32>
    %46 = arith.mulf %8, %45 : vector<8x512xf32>
    %47 = arith.truncf %46 : vector<8x512xf32> to vector<8x512xbf16>
    %48 = arith.extf %47 : vector<8x512xbf16> to vector<8x512xf32>
    %cst_26 = arith.constant dense<0.000000e+00> : vector<8x32xf32>
    %49 = tpu.matmul %48, %9, %cst_26 {dimension_numbers = #tpu.dot_dimension_numbers<[1], [0], [0], [1], [0, 0, 1, 1], [], []>} : vector<8x512xf32>, vector<512x32xf32>, vector<8x32xf32> -> vector<8x32xf32>
    %50 = arith.subf %46, %48 : vector<8x512xf32>
    %cst_27 = arith.constant dense<0.000000e+00> : vector<8x32xf32>
    %51 = tpu.matmul %50, %9, %cst_27 {dimension_numbers = #tpu.dot_dimension_numbers<[1], [0], [0], [1], [0, 0, 1, 1], [], []>} : vector<8x512xf32>, vector<512x32xf32>, vector<8x32xf32> -> vector<8x32xf32>
    %52 = arith.addf %49, %51 : vector<8x32xf32>
    %cst_28 = arith.constant 5.000000e-01 : f32
    %53 = vector.broadcast %cst_28 : f32 to vector<8x32xf32>
    %54 = arith.mulf %53, %52 : vector<8x32xf32>
    %55 = math.tanh %54 : vector<8x32xf32>
    %cst_29 = arith.constant 1.000000e+00 : f32
    %56 = vector.broadcast %cst_29 : f32 to vector<8x32xf32>
    %57 = arith.addf %55, %56 : vector<8x32xf32>
    %cst_30 = arith.constant 5.000000e-01 : f32
    %58 = vector.broadcast %cst_30 : f32 to vector<8x32xf32>
    %59 = arith.mulf %58, %57 : vector<8x32xf32>
    %60 = arith.mulf %52, %59 : vector<8x32xf32>
    %61 = arith.mulf %26, %43 : vector<8x32xf32>
    %c0_31 = arith.constant 0 : index
    %c0_32 = arith.constant 0 : index
    %62 = vector.load %arg7[%c0_31, %c0_32] : memref<2x32xf32, #tpu.memory_space<vmem>>, vector<2x32xf32>
    %c0_33 = arith.constant 0 : index
    %c0_34 = arith.constant 0 : index
    %63 = vector.load %arg8[%c0_33, %c0_34] : memref<2x32xf32, #tpu.memory_space<vmem>>, vector<2x32xf32>
    %c0_35 = arith.constant 0 : index
    %c0_36 = arith.constant 0 : index
    %64 = vector.load %arg9[%c0_35, %c0_36] : memref<4x32xf32, #tpu.memory_space<vmem>>, vector<4x32xf32>
    %c0_37 = arith.constant 0 : index
    %c0_38 = arith.constant 0 : index
    %65 = vector.load %arg10[%c0_37, %c0_38] : memref<4x1xf32, #tpu.memory_space<vmem>>, vector<4x1xf32>
    %66 = vector.extract_strided_slice %62 {offsets = [0, 0], sizes = [1, 32], strides = [1, 1]} : vector<2x32xf32> to vector<1x32xf32>
    %67 = vector.broadcast %66 : vector<1x32xf32> to vector<8x32xf32>
    %68 = arith.mulf %60, %67 : vector<8x32xf32>
    %69 = vector.extract_strided_slice %63 {offsets = [0, 0], sizes = [1, 32], strides = [1, 1]} : vector<2x32xf32> to vector<1x32xf32>
    %70 = vector.broadcast %69 : vector<1x32xf32> to vector<8x32xf32>
    %71 = arith.addf %68, %70 : vector<8x32xf32>
    %72 = vector.extract_strided_slice %62 {offsets = [1, 0], sizes = [1, 32], strides = [1, 1]} : vector<2x32xf32> to vector<1x32xf32>
    %73 = vector.broadcast %72 : vector<1x32xf32> to vector<8x32xf32>
    %74 = arith.mulf %60, %73 : vector<8x32xf32>
    %75 = vector.extract_strided_slice %63 {offsets = [1, 0], sizes = [1, 32], strides = [1, 1]} : vector<2x32xf32> to vector<1x32xf32>
    %76 = vector.broadcast %75 : vector<1x32xf32> to vector<8x32xf32>
    %77 = arith.addf %74, %76 : vector<8x32xf32>
    %cst_39 = arith.constant dense<0.000000e+00> : vector<8x8xf32>
    %78 = tpu.matmul %71, %77, %cst_39 {dimension_numbers = #tpu.dot_dimension_numbers<[1], [1], [0], [0], [0, 0, 1, 0], [], []>} : vector<8x32xf32>, vector<8x32xf32>, vector<8x8xf32> -> vector<8x8xf32>
    %cst_40 = arith.constant 0.176776692 : f32
    %79 = vector.broadcast %cst_40 : f32 to vector<8x8xf32>
    %80 = arith.mulf %78, %79 : vector<8x8xf32>
    %cst_41 = arith.constant dense<0xFF800000> : vector<8xf32>
    %81 = vector.multi_reduction <maximumf>, %80, %cst_41 [1] : vector<8x8xf32> to vector<8xf32>
    %82 = vector.shape_cast %81 : vector<8xf32> to vector<8x1xf32>
    %83 = vector.broadcast %82 : vector<8x1xf32> to vector<8x8xf32>
    %84 = arith.subf %80, %83 : vector<8x8xf32>
    %85 = math.exp %84 : vector<8x8xf32>
    %cst_42 = arith.constant dense<0.000000e+00> : vector<8xf32>
    %86 = vector.multi_reduction <add>, %85, %cst_42 [1] : vector<8x8xf32> to vector<8xf32>
    %87 = vector.shape_cast %86 : vector<8xf32> to vector<8x1xf32>
    %88 = arith.mulf %71, %77 : vector<8x32xf32>
    %cst_43 = arith.constant dense<0.000000e+00> : vector<8xf32>
    %89 = vector.multi_reduction <add>, %88, %cst_43 [1] : vector<8x32xf32> to vector<8xf32>
    %90 = vector.shape_cast %89 : vector<8xf32> to vector<8x1xf32>
    %cst_44 = arith.constant 0.176776692 : f32
    %91 = vector.broadcast %cst_44 : f32 to vector<8x1xf32>
    %92 = arith.mulf %90, %91 : vector<8x1xf32>
    %93 = arith.subf %92, %82 : vector<8x1xf32>
    %94 = math.exp %93 : vector<8x1xf32>
    %95 = arith.divf %94, %87 : vector<8x1xf32>
    %96 = vector.broadcast %95 : vector<8x1xf32> to vector<8x32xf32>
    %97 = arith.mulf %96, %61 : vector<8x32xf32>
    %98 = arith.truncf %64 : vector<4x32xf32> to vector<4x32xbf16>
    %99 = arith.extf %98 : vector<4x32xbf16> to vector<4x32xf32>
    %100 = arith.truncf %97 : vector<8x32xf32> to vector<8x32xbf16>
    %101 = arith.extf %100 : vector<8x32xbf16> to vector<8x32xf32>
    %cst_45 = arith.constant dense<0.000000e+00> : vector<4x8xf32>
    %102 = tpu.matmul %99, %101, %cst_45 {dimension_numbers = #tpu.dot_dimension_numbers<[1], [1], [0], [0], [0, 0, 1, 0], [], []>} : vector<4x32xf32>, vector<8x32xf32>, vector<4x8xf32> -> vector<4x8xf32>
    %103 = arith.subf %64, %99 : vector<4x32xf32>
    %cst_46 = arith.constant dense<0.000000e+00> : vector<4x8xf32>
    %104 = tpu.matmul %103, %101, %cst_46 {dimension_numbers = #tpu.dot_dimension_numbers<[1], [1], [0], [0], [0, 0, 1, 0], [], []>} : vector<4x32xf32>, vector<8x32xf32>, vector<4x8xf32> -> vector<4x8xf32>
    %105 = arith.addf %102, %104 : vector<4x8xf32>
    %106 = arith.subf %97, %101 : vector<8x32xf32>
    %cst_47 = arith.constant dense<0.000000e+00> : vector<4x8xf32>
    %107 = tpu.matmul %99, %106, %cst_47 {dimension_numbers = #tpu.dot_dimension_numbers<[1], [1], [0], [0], [0, 0, 1, 0], [], []>} : vector<4x32xf32>, vector<8x32xf32>, vector<4x8xf32> -> vector<4x8xf32>
    %108 = arith.addf %105, %107 : vector<4x8xf32>
    %109 = vector.broadcast %65 : vector<4x1xf32> to vector<4x8xf32>
    %110 = arith.addf %108, %109 : vector<4x8xf32>
    %c0_48 = arith.constant 0 : index
    %c0_49 = arith.constant 0 : index
    %c0_50 = arith.constant 0 : index
    %111 = vector.load %arg11[%c0_48, %c0_49, %c0_50] : memref<1x4x8xf32, #tpu.memory_space<vmem>>, vector<1x4x8xf32>
    %112 = vector.shape_cast %111 : vector<1x4x8xf32> to vector<4x8xf32>
    %113 = vector.shape_cast %110 : vector<4x8xf32> to vector<1x4x8xf32>
    tpu.vector_store %arg11[%c0_48, %c0_49, %c0_50], %113 {strides = array<i32>} : memref<1x4x8xf32, #tpu.memory_space<vmem>>, vector<1x4x8xf32>,
    return
  }
  func.func @transform_0(%arg0: i32) -> (i32, i32, i32) {
    %c0_i32 = arith.constant 0 : i32
    %c0_i32_0 = arith.constant 0 : i32
    %c0_i32_1 = arith.constant 0 : i32
    return %arg0, %c0_i32, %c0_i32_0 : i32, i32, i32
  }
  func.func @transform_1(%arg0: i32) -> (i32, i32, i32) {
    %c0_i32 = arith.constant 0 : i32
    %c0_i32_0 = arith.constant 0 : i32
    %c0_i32_1 = arith.constant 0 : i32
    return %arg0, %c0_i32, %c0_i32_0 : i32, i32, i32
  }
  func.func @transform_2(%arg0: i32) -> (i32, i32, i32) {
    %c0_i32 = arith.constant 0 : i32
    %c0_i32_0 = arith.constant 0 : i32
    %c0_i32_1 = arith.constant 0 : i32
    return %arg0, %c0_i32, %c0_i32_0 : i32, i32, i32
  }
  func.func @transform_3(%arg0: i32) -> (i32, i32, i32) {
    %c0_i32 = arith.constant 0 : i32
    %c0_i32_0 = arith.constant 0 : i32
    %c0_i32_1 = arith.constant 0 : i32
    return %arg0, %c0_i32, %c0_i32_0 : i32, i32, i32
  }
  func.func @transform_4(%arg0: i32) -> (i32, i32) {
    %c0_i32 = arith.constant 0 : i32
    %c0_i32_0 = arith.constant 0 : i32
    %c0_i32_1 = arith.constant 0 : i32
    return %c0_i32, %c0_i32_0 : i32, i32
  }
  func.func @transform_5(%arg0: i32) -> (i32, i32) {
    %c0_i32 = arith.constant 0 : i32
    %c0_i32_0 = arith.constant 0 : i32
    %c0_i32_1 = arith.constant 0 : i32
    return %c0_i32, %c0_i32_0 : i32, i32
  }
  func.func @transform_6(%arg0: i32) -> (i32, i32) {
    %c0_i32 = arith.constant 0 : i32
    %c0_i32_0 = arith.constant 0 : i32
    %c0_i32_1 = arith.constant 0 : i32
    return %c0_i32, %c0_i32_0 : i32, i32
  }
  func.func @transform_7(%arg0: i32) -> (i32, i32) {
    %c0_i32 = arith.constant 0 : i32
    %c0_i32_0 = arith.constant 0 : i32
    %c0_i32_1 = arith.constant 0 : i32
    return %c0_i32, %c0_i32_0 : i32, i32
  }
  func.func @transform_8(%arg0: i32) -> (i32, i32) {
    %c0_i32 = arith.constant 0 : i32
    %c0_i32_0 = arith.constant 0 : i32
    %c0_i32_1 = arith.constant 0 : i32
    return %c0_i32, %c0_i32_0 : i32, i32
  }
  func.func @transform_9(%arg0: i32) -> (i32, i32) {
    %c0_i32 = arith.constant 0 : i32
    %c0_i32_0 = arith.constant 0 : i32
    %c0_i32_1 = arith.constant 0 : i32
    return %c0_i32, %c0_i32_0 : i32, i32
  }
  func.func @transform_10(%arg0: i32) -> (i32, i32, i32) {
    %c0_i32 = arith.constant 0 : i32
    %c0_i32_0 = arith.constant 0 : i32
    %c0_i32_1 = arith.constant 0 : i32
    return %arg0, %c0_i32, %c0_i32_0 : i32, i32, i32
  }
}

</mosaic_0001>

<bundles_post_ra>
// kernel: gau_forward.1
= control target key start
LH: loop header
LB: loop body
LE: loop exit
PB: predicated region body
PF: predicated region fallthrough
CT: control target
= control target key end

     0   :  { %s3893_s0 = inlined_call_operand.vmem [shape: f32[2,8,16], index: 0, kind: input, shape index: {}]   ;;  %s3894_s1 = inlined_call_operand.vmem [shape: f32[2,8,512], index: 1, kind: input, shape index: {}]   ;;  %s3895_s2 = inlined_call_operand.vmem [shape: f32[2,8,512], index: 2, kind: input, shape index: {}]   ;;  %s3896_s3 = inlined_call_operand.vmem [shape: f32[2,8,512], index: 3, kind: input, shape index: {}]   ;;  %s3897_s4 = inlined_call_operand.vmem [shape: f32[16,512], index: 4, kind: input, shape index: {}]   ;;  %s3898_s5 = inlined_call_operand.vmem [shape: f32[512,32], index: 5, kind: input, shape index: {}]   ;;  %s3899_s6 = inlined_call_operand.vmem [shape: f32[2,32], index: 6, kind: input, shape index: {}]   ;;  %s3900_s7 = inlined_call_operand.vmem [shape: f32[2,32], index: 7, kind: input, shape index: {}]   ;;  %s3901_s8 = inlined_call_operand.vmem [shape: f32[4,32], index: 8, kind: input, shape index: {}]   ;;  %s3902_s9 = inlined_call_operand.vmem [shape: f32[4,1], index: 9, kind: input, shape index: {}]   ;;  %s3903_s10 = inlined_call_operand.hbm [shape: f32[2,4,8], index: 10, kind: output, shape index: {}]  }
   0x1   :  { %3904 = sst [smem:[#allocation5_spill]] %s3893_s0 }
   0x2   :  { %3905 = sst [smem:[#allocation6_spill]] %s3897_s4 }
   0x3   :  { %15 = vsyncpa [#allocation3], 0 }
   0x4   :  { %17 = vsyncpa [#allocation3 + $0x1], 0  ;;  %s3229_s13 = smov 0   ;;  %s3231_s14 = smov 0  }
   0x5   :  { %s3233_s15 = smov 0   ;;  %s3235_s16 = smov 0  }
   0x6 LB: > { %s3250_s17 = sadd.s32 4294967295, %s3168_s16   ;;  %s2167_s18 = sadd.s32 4294967294, %s3168_s16   ;;  %s3168_s16 = sphi %s3235_s16, %s3913_s16   ;;  %s3164_s15 = sphi %s3233_s15, %s3912_s15   ;;  %s3160_s14 = sphi %s3231_s14, %s3911_s14   ;;  %s3156_s13 = sphi %s3229_s13, %s3910_s13  }
   0x7   : > { %s3254_s19 = sadd.s32 1, %s3168_s16   ;;  %s260_s20 = sadd.s32 1, %s3164_s15 }
   0x8   : > { %s257_s21 = ssub.s32 %s3168_s16, %s3254_s19  ;;  %p270_p0 = scmp.ne.s32.totalorder %s3164_s15, %s3160_s14 }
   0x9   : > { %p258_p1 = scmp.eq.s32.totalorder %s257_s21, 0  ;;  %p271_p2 = scmp.eq.s32.totalorder %s3250_s17, 1 }
   0xa   : > { %p276_p3 = scmp.ne.s32.totalorder %s3160_s14, %s3156_s13  ;;  %p277_p4 = scmp.eq.s32.totalorder %s2167_s18, 1 }
   0xb   : > { %s3265_s22 = scalar_select %p258_p1, %s3164_s15, %s260_s20  }
   0xc   : > { %p3267_p5 = por %p271_p2, %p270_p0  ;;  %p3271_p6 = por %p277_p4, %p276_p3 }
   0xd   : > { %p2170_p7 = scmp.ge.s32.totalorder %s3168_s16, 1  ;;  %p344_p8 = scmp.lt.s32.totalorder %s3168_s16, 3 }
   0xf   : > { %p345_p9 = pnand %p2170_p7, %p344_p8 }
  0x10   : > { %s3908_s4 = sld [smem:[#allocation6_spill]] (!%p345_p9)  ;;  %p396_p10 = scmp.lt.s32.totalorder (!%p345_p9), %s3250_s17, 1  ;;  %v3170_v7 = vmov (!%p345_p9), 0.0   ;;  %v734_v15 = vld [vmem:[%s3898_s5 + $0x80] sm:$0xff] (!%p345_p9)  ;;  %v735_v17 = vld [vmem:[%s3898_s5 + $0x88] sm:$0xff] (!%p345_p9)  ;;  %vm427_vm0 = vcmask (!%p345_p9), 130048  }
  0x11   : > { %348 = sbr.rel (%p345_p9) target bundleno = 1441 (0x5a1), region = 60  ;;  %495 = vmatprep.mubr.f32.mxu0 (!%p345_p9), %v3170_v7  ;;  %566 = vmatprep.mubr.f32.mxu1 (!%p345_p9), %v3170_v7  ;;  %s3909_s0 = sld [smem:[#allocation5_spill]] (!%p345_p9)  ;;  %v766_v18 = vld [vmem:[%s3898_s5 + $0x180] sm:$0xff] (!%p345_p9)  ;;  %v767_v19 = vld [vmem:[%s3898_s5 + $0x188] sm:$0xff] (!%p345_p9)  ;;  %v3323_v21 = vpack.c.bf16 (!%p345_p9), %v735_v17, %v734_v15  ;;  %v736_v27 = vld [vmem:[%s3898_s5 + $0x90] sm:$0xff] (!%p345_p9)  ;;  %vm3171_vm1 = vmmov (!%p345_p9), 0  }
  0x12   : > { %v3325_v22 = vpack.c.bf16 (!%p345_p9), %v767_v19, %v766_v18  ;;  %v718_v23 = vld [vmem:[%s3898_s5] sm:$0xff] (!%p345_p9)  ;;  %v719_v24 = vld [vmem:[%s3898_s5 + $0x8] sm:$0xff] (!%p345_p9)  ;;  %v737_v28 = vld [vmem:[%s3898_s5 + $0x98] sm:$0xff] (!%p345_p9)  ;;  %vm1722_vm2 = vcmask (!%p345_p9), 261120   ;;  %vm1800_vm3 = vcmask (!%p345_p9), 64512   ;;  %s393_s26 = sand.u32 (!%p345_p9), 1, %s3160_s14  }
  0x13   : > { %v750_v25 = vld [vmem:[%s3898_s5 + $0x100] sm:$0xff] (!%p345_p9)  ;;  %v751_v26 = vld [vmem:[%s3898_s5 + $0x108] sm:$0xff] (!%p345_p9)  ;;  %v768_v29 = vld [vmem:[%s3898_s5 + $0x190] sm:$0xff] (!%p345_p9)  ;;  %v3357_v31 = vpack.c.bf16 (!%p345_p9), %v719_v24, %v718_v23  ;;  %v3367_v35 = vpack.c.bf16 (!%p345_p9), %v737_v28, %v736_v27  ;;  %s2192_s28 = sshll.u32 (!%p345_p9), %s3250_s17, 6  ;;  %vm2056_vm4 = vcmask (!%p345_p9), 60416  }
  0x14   : > { %v769_v30 = vld [vmem:[%s3898_s5 + $0x198] sm:$0xff] (!%p345_p9)  ;;  %v3359_v32 = vpack.c.bf16 (!%p345_p9), %v751_v26, %v750_v25  ;;  %v720_v33 = vld [vmem:[%s3898_s5 + $0x10] sm:$0xff] (!%p345_p9)  ;;  %v738_v39 = vld [vmem:[%s3898_s5 + $0xa0] sm:$0xff] (!%p345_p9)  ;;  %s3851_s18 = scalar_lea.hbm (!%p345_p9), %s3903_s10, %s2192_s28 }
  0x15   : > { %v721_v34 = vld [vmem:[%s3898_s5 + $0x18] sm:$0xff] (!%p345_p9)  ;;  %v3369_v36 = vpack.c.bf16 (!%p345_p9), %v769_v30, %v768_v29  ;;  %v752_v37 = vld [vmem:[%s3898_s5 + $0x110] sm:$0xff] (!%p345_p9)  ;;  %v739_v40 = vld [vmem:[%s3898_s5 + $0xa8] sm:$0xff] (!%p345_p9) }
  0x16   : > { %v417_v0 = vld [vmem:[%s3908_s4 + $0x8] sm:$0xff] (!%p345_p9)  ;;  %v419_v2 = vld [vmem:[%s3908_s4 + $0x18] sm:$0xff] (!%p345_p9)  ;;  %v416_v5 = vld [vmem:[%s3908_s4] sm:$0xff] (!%p345_p9)  ;;  %v3393_v43 = vpack.c.bf16 (!%p345_p9), %v721_v34, %v720_v33  ;;  %v3405_v47 = vpack.c.bf16 (!%p345_p9), %v739_v40, %v738_v39 }
  0x17   : > { %v421_v1 = vld [vmem:[%s3908_s4 + $0x28] sm:$0xff] (!%p345_p9)  ;;  %v423_v4 = vld [vmem:[%s3908_s4 + $0x38] sm:$0xff] (!%p345_p9)  ;;  %v420_v6 = vld [vmem:[%s3908_s4 + $0x20] sm:$0xff] (!%p345_p9) }
  0x18   : > { %v2646_v3 = vpack.c.bf16 %v421_v1, %v417_v0  ;;  %v2650_v8 = vpack.c.bf16 %v423_v4, %v419_v2  ;;  %v2648_v9 = vpack.c.bf16 %v420_v6, %v416_v5  ;;  %v418_v10 = vld [vmem:[%s3908_s4 + $0x10] sm:$0xff]  ;;  %s3305_s30 = scalar_select %p396_p10, %s3250_s17, 1  ;;  %v753_v38 = vld [vmem:[%s3898_s5 + $0x118] sm:$0xff]  ;;  %v770_v41 = vld [vmem:[%s3898_s5 + $0x1a0] sm:$0xff] }
  0x19   : > { %v422_v11 = vld [vmem:[%s3908_s4 + $0x30] sm:$0xff]  ;;  %v771_v42 = vld [vmem:[%s3898_s5 + $0x1a8] sm:$0xff]  ;;  %v3395_v44 = vpack.c.bf16 %v753_v38, %v752_v37  ;;  %v722_v45 = vld [vmem:[%s3898_s5 + $0x20] sm:$0xff]  ;;  %s3173_s17 = smov [#allocation2]  }
  0x1a   : > { %2647 = vmatprep.subr.bf16.mxu0 %v2646_v3  ;;  %v2652_v12 = vpack.c.bf16 %v422_v11, %v418_v10  ;;  %2651 = vmatprep.subr.bf16.mxu1 %v2650_v8  ;;  %s2172_s11 = sshll.u32 %s3305_s30, 3  ;;  %v723_v46 = vld [vmem:[%s3898_s5 + $0x28] sm:$0xff]  ;;  %v3407_v48 = vpack.c.bf16 %v771_v42, %v770_v41  ;;  %v754_v49 = vld [vmem:[%s3898_s5 + $0x120] sm:$0xff]  ;;  %v740_v51 = vld [vmem:[%s3898_s5 + $0xb0] sm:$0xff]  ;;  %s3110_s21 = sshll.u32 %s3173_s17, 4  ;;  %s3111_s21 = int_to_ptr.vmem [resolvable:$false] %s3110_s21 }
  0x1b   : > { %2649 = vmatpush1.bf16.msra.mxu0 %v2648_v9  ;;  %s399_s20 = scalar_lea.vmem %s3909_s0, %s2172_s11  ;;  %v755_v50 = vld [vmem:[%s3898_s5 + $0x128] sm:$0xff]  ;;  %v741_v52 = vld [vmem:[%s3898_s5 + $0xb8] sm:$0xff]  ;;  %v772_v53 = vld [vmem:[%s3898_s5 + $0x1b0] sm:$0xff]  ;;  %v3429_v55 = vpack.c.bf16 %v723_v46, %v722_v45  ;;  %s2195_s0 = sshll.u32 %s3305_s30, 5 }
  0x1c   : > { %2653 = vmatpush1.bf16.msra.mxu1 %v2652_v12  ;;  %2655 = vmatprep.subr.bf16.mxu0 %v2646_v3  ;;  %v415_v13 = vld [vmem:[%s399_s20] sm:$0xff]  ;;  %v773_v54 = vld [vmem:[%s3898_s5 + $0x1b8] sm:$0xff]  ;;  %v3431_v56 = vpack.c.bf16 %v755_v50, %v754_v49  ;;  %v724_v57 = vld [vmem:[%s3898_s5 + $0x30] sm:$0xff]  ;;  %v3441_v59 = vpack.c.bf16 %v741_v52, %v740_v51  ;;  %s404_s4 = scalar_lea.vmem %s3894_s1, %s2195_s0  ;;  %s409_s27 = scalar_lea.vmem %s3895_s2, %s2195_s0 }
  0x1d   : > { %2659 = vmatprep.subr.bf16.mxu1 %v2650_v8  ;;  %v424_v14 = vpack.c.bf16 %v415_v13, %v415_v13  ;;  %v725_v58 = vld [vmem:[%s3898_s5 + $0x38] sm:$0xff]  ;;  %v3443_v60 = vpack.c.bf16 %v773_v54, %v772_v53  ;;  %v756_v61 = vld [vmem:[%s3898_s5 + $0x130] sm:$0xff]  ;;  %v742_v63 = vld [vmem:[%s3898_s5 + $0xc0] sm:$0xff]  ;;  %s414_s12 = scalar_lea.vmem %s3896_s3, %s2195_s0  ;;  %s2059_s0 = scalar_lea.sflag [#allocation3], %s393_s26 }
  0x1e   : > { %v757_v62 = vld [vmem:[%s3898_s5 + $0x138] sm:$0xff]  ;;  %v743_v0 = vld [vmem:[%s3898_s5 + $0xc8] sm:$0xff]  ;;  %v774_v1 = vld [vmem:[%s3898_s5 + $0x1c0] sm:$0xff]  ;;  %v3465_v3 = vpack.c.bf16 %v725_v58, %v724_v57 }
  0x1f   : > { %v425_v16 = vunpack.c.l.bf16 %v424_v14  ;;  %v775_v2 = vld [vmem:[%s3898_s5 + $0x1c8] sm:$0xff]  ;;  %v3467_v4 = vpack.c.bf16 %v757_v62, %v756_v61  ;;  %v726_v5 = vld [vmem:[%s3898_s5 + $0x40] sm:$0xff]  ;;  %v3477_v8 = vpack.c.bf16 %v743_v0, %v742_v63  ;;  %v776_v14 = vld [vmem:[%s3898_s5 + $0x1d0] sm:$0xff] }
  0x20   : > { %v727_v6 = vld [vmem:[%s3898_s5 + $0x48] sm:$0xff]  ;;  %v758_v10 = vld [vmem:[%s3898_s5 + $0x140] sm:$0xff]  ;;  %v777_v15 = vld [vmem:[%s3898_s5 + $0x1d8] sm:$0xff] }
  0x21   : > { %v426_v20 = vsub.f32 %v415_v13, %v425_v16  ;;  %v759_v11 = vld [vmem:[%s3898_s5 + $0x148] sm:$0xff]  ;;  %v745_v13 = vld [vmem:[%s3898_s5 + $0xd8] sm:$0xff]  ;;  %v728_v18 = vld [vmem:[%s3898_s5 + $0x50] sm:$0xff] }
  0x22   : > { %v3503_v17 = vpack.c.bf16 %v759_v11, %v758_v10  ;;  %v729_v23 = vld [vmem:[%s3898_s5 + $0x58] sm:$0xff]  ;;  %v760_v24 = vld [vmem:[%s3898_s5 + $0x150] sm:$0xff]  ;;  %v746_v28 = vld [vmem:[%s3898_s5 + $0xe0] sm:$0xff] }
  0x23   : > { %2179 = vmatmul.mubr.msk.f32.vlgmr.msra.gmra.mrb[0].mxu0 %vm427_vm0, %v426_v20  ;;  %2180 = vmatmul.mubr.msk.f32.vlgmr.msra.gmra.mrb[0].mxu1 %vm427_vm0, %v426_v20  ;;  %v3512_v20 = vpack.c.bf16 %v777_v15, %v776_v14  ;;  %v761_v25 = vld [vmem:[%s3898_s5 + $0x158] sm:$0xff]  ;;  %v3525_v26 = vpack.c.bf16 %v729_v23, %v728_v18  ;;  %v747_v29 = vld [vmem:[%s3898_s5 + $0xe8] sm:$0xff]  ;;  %v778_v30 = vld [vmem:[%s3898_s5 + $0x1e0] sm:$0xff] }
  0x24   : > { %2657 = vmatpush1.bf16.msra.mxu0 %v2648_v9  ;;  %2661 = vmatpush1.bf16.msra.mxu1 %v2652_v12  ;;  %v3479_v9 = vpack.c.bf16 %v775_v2, %v774_v1  ;;  %v744_v12 = vld [vmem:[%s3898_s5 + $0xd0] sm:$0xff]  ;;  %v3527_v27 = vpack.c.bf16 %v761_v25, %v760_v24  ;;  %v3542_v33 = vpack.c.bf16 %v747_v29, %v746_v28  ;;  %v779_v34 = vld [vmem:[%s3898_s5 + $0x1e8] sm:$0xff]  ;;  %v730_v37 = vld [vmem:[%s3898_s5 + $0x60] sm:$0xff] }
  0x25   : > { %640 = vmatprep.mubr.f32.mxu0 %v3170_v7  ;;  %711 = vmatprep.mubr.f32.mxu1 %v3170_v7  ;;  %v3510_v19 = vpack.c.bf16 %v745_v13, %v744_v12  ;;  %v731_v38 = vld [vmem:[%s3898_s5 + $0x68] sm:$0xff]  ;;  %v3553_v39 = vpack.c.bf16 %v779_v34, %v778_v30  ;;  %v762_v41 = vld [vmem:[%s3898_s5 + $0x160] sm:$0xff]  ;;  %v748_v46 = vld [vmem:[%s3898_s5 + $0xf0] sm:$0xff] }
  0x26   : > { %2663 = vmatprep.subr.bf16.mxu0 %v3323_v21  ;;  %2695 = vmatprep.subr.bf16.mxu1 %v3325_v22  ;;  %v3555_v40 = vpack.c.bf16 %v731_v38, %v730_v37  ;;  %v763_v42 = vld [vmem:[%s3898_s5 + $0x168] sm:$0xff]  ;;  %v749_v49 = vld [vmem:[%s3898_s5 + $0xf8] sm:$0xff]  ;;  %v780_v50 = vld [vmem:[%s3898_s5 + $0x1f0] sm:$0xff] }
  0x27   : > { %v3564_v45 = vpack.c.bf16 %v763_v42, %v762_v41  ;;  %v3578_v51 = vpack.c.bf16 %v749_v49, %v748_v46  ;;  %v781_v52 = vld [vmem:[%s3898_s5 + $0x1f8] sm:$0xff]  ;;  %v732_v53 = vld [vmem:[%s3898_s5 + $0x70] sm:$0xff]  ;;  %v782_v0 = vld [vmem:[%s404_s4] sm:$0xff] }
  0x28   : > { %v733_v54 = vld [vmem:[%s3898_s5 + $0x78] sm:$0xff]  ;;  %v3589_v57 = vpack.c.bf16 %v781_v52, %v780_v50  ;;  %v764_v61 = vld [vmem:[%s3898_s5 + $0x170] sm:$0xff]  ;;  %v1087_v1 = vld [vmem:[%s409_s27] sm:$0xff] }
  0x29   : > { %v3591_v58 = vpack.c.bf16 %v733_v54, %v732_v53  ;;  %v765_v62 = vld [vmem:[%s3898_s5 + $0x178] sm:$0xff]  ;;  %v1392_v2 = vld [vmem:[%s414_s12] sm:$0xff]  ;;  %v1394_v10 = vld [vmem:[%s414_s12 + $0x10] sm:$0xff] }
  0x2a   : > { %v3600_v63 = vpack.c.bf16 %v765_v62, %v764_v61  ;;  %v783_v11 = vld [vmem:[%s404_s4 + $0x8] sm:$0xff]  ;;  %v785_v41 = vld [vmem:[%s404_s4 + $0x18] sm:$0xff] }
  0x2b   : > { %2181 = vmatmul.mubr.msk.f32.vlgmr.msra.gmra.mrb[0].mxu0 %vm427_vm0, %v425_v16  ;;  %2182 = vmatmul.mubr.msk.f32.vlgmr.msra.gmra.mrb[0].mxu1 %vm427_vm0, %v425_v16  ;;  %v3501_v16 = vpack.c.bf16 %v727_v6, %v726_v5  ;;  %v784_v5 = vld [vmem:[%s404_s4 + $0x10] sm:$0xff]  ;;  %v1088_v12 = vld [vmem:[%s409_s27 + $0x8] sm:$0xff]  ;;  %v1090_v53 = vld [vmem:[%s409_s27 + $0x18] sm:$0xff]  ;;  %s3112_s4 = scalar_lea.vmem %s3111_s21, 128 }
  0x2c   : > { %2665 = vmatpush3.bf16.msra.mxu0 %v3357_v31  ;;  %2697 = vmatpush3.bf16.msra.mxu1 %v3359_v32  ;;  %v1089_v6 = vld [vmem:[%s409_s27 + $0x10] sm:$0xff]  ;;  %v1393_v38 = vld [vmem:[%s414_s12 + $0x8] sm:$0xff]  ;;  %v1395_v54 = vld [vmem:[%s414_s12 + $0x18] sm:$0xff]  ;;  %s2171_s27 = sshll.u32 %s393_s26, 2 }
  0x2d   : > { %2667 = vmatprep.subr.bf16.mxu0 %v3367_v35  ;;  %2699 = vmatprep.subr.bf16.mxu1 %v3369_v36  ;;  %s395_s29 = scalar_lea.vmem [#allocation2], %s2171_s27 }
  0x2e   : > { %s2072_s12 = sshll.u32 %s395_s29, 4  ;;  %s3853_s12 = int_to_ptr.vmem [resolvable:$true] %s2072_s12 }
  0x2f   : > { %s3106_s20 = scalar_lea.vmem %s3853_s12, 64  ;;  %p3113_p0 = scmp.lt.s32.totalorder %s3853_s12, %s3111_s21 }
  0x30   : > { %2669 = vmatpush3.bf16.msra.mxu0 %v3393_v43  ;;  %2701 = vmatpush3.bf16.msra.mxu1 %v3395_v44  ;;  %p3107_p11 = scmp.ne.s32.totalorder %s3853_s12, %s3106_s20  ;;  %p3114_p1 = scmp.lt.s32.totalorder %s3112_s4, %s3106_s20 }
  0x31   : > { %2671 = vmatprep.subr.bf16.mxu0 %v3405_v47  ;;  %2703 = vmatprep.subr.bf16.mxu1 %v3407_v48 }
  0x32   : > { %p3108_p12 = pnand %p3107_p11, %p3267_p5  ;;  %p3115_p2 = por %p3114_p1, %p3113_p0 }
  0x34   : > { %2673 = vmatpush3.bf16.msra.mxu0 %v3429_v55  ;;  %2705 = vmatpush3.bf16.msra.mxu1 %v3431_v56  ;;  %p3109_p13 = pneg %p3108_p12 }
  0x35   : > { %2675 = vmatprep.subr.bf16.mxu0 %v3441_v59  ;;  %2707 = vmatprep.subr.bf16.mxu1 %v3443_v60 }
  0x36   : > { %p3116_p3 = pnand %p3115_p2, %p3109_p13 }
  0x38   : > { %2677 = vmatpush3.bf16.msra.mxu0 %v3465_v3  ;;  %2709 = vmatpush3.bf16.msra.mxu1 %v3467_v4 }
  0x39   : > { %2679 = vmatprep.subr.bf16.mxu0 %v3477_v8  ;;  %2711 = vmatprep.subr.bf16.mxu1 %v3479_v9 }
  0x3c   : > { %2681 = vmatpush3.bf16.msra.mxu0 %v3501_v16  ;;  %2713 = vmatpush3.bf16.msra.mxu1 %v3503_v17 }
  0x3d   : > { %2683 = vmatprep.subr.bf16.mxu0 %v3510_v19  ;;  %2715 = vmatprep.subr.bf16.mxu1 %v3512_v20 }
  0x40   : > { %2685 = vmatpush3.bf16.msra.mxu0 %v3525_v26  ;;  %2717 = vmatpush3.bf16.msra.mxu1 %v3527_v27 }
  0x41   : > { %2687 = vmatprep.subr.bf16.mxu0 %v3542_v33  ;;  %2719 = vmatprep.subr.bf16.mxu1 %v3553_v39 }
  0x44   : > { %2689 = vmatpush3.bf16.msra.mxu0 %v3555_v40  ;;  %2721 = vmatpush3.bf16.msra.mxu1 %v3564_v45 }
  0x45   : > { %2691 = vmatprep.subr.bf16.mxu0 %v3578_v51  ;;  %2723 = vmatprep.subr.bf16.mxu1 %v3589_v57 }
  0x48   : > { %2693 = vmatpush3.bf16.msra.mxu0 %v3591_v58  ;;  %2725 = vmatpush3.bf16.msra.mxu1 %v3600_v63 }
  0x49   : > { %2727 = vmatprep.subr.bf16.mxu0 %v3323_v21  ;;  %2759 = vmatprep.subr.bf16.mxu1 %v3325_v22 }
  0xfe   : > { %v642_v13 = vpop.f32.mrb[0].mxu0  ;;  %v713_v14 = vpop.f32.mrb[0].mxu1 }
  0xff   : > { %v786_v15 = vmul.f32 %v782_v0, %v642_v13  ;;  %v3617_v18 = vmul.f32 %v1087_v1, %v642_v13  ;;  %v3619_v23 = vmul.f32 %v1392_v2, %v642_v13  ;;  %v788_v24 = vmul.f32 %v784_v5, %v713_v14  ;;  %v644_v25 = vpop.f32.mrb[1].mxu0  ;;  %v715_v28 = vpop.f32.mrb[1].mxu1 }
 0x100   : > { %v3621_v29 = vmul.f32 %v1089_v6, %v713_v14  ;;  %v3623_v30 = vmul.f32 %v1394_v10, %v713_v14  ;;  %v787_v34 = vmul.f32 %v783_v11, %v644_v25  ;;  %v3625_v37 = vmul.f32 %v1088_v12, %v644_v25 }
 0x101   : > { %v790_v42 = vpack.c.bf16 %v786_v15, %v786_v15  ;;  %v792_v46 = vpack.c.bf16 %v788_v24, %v788_v24  ;;  %v3627_v50 = vmul.f32 %v1393_v38, %v644_v25  ;;  %v789_v52 = vmul.f32 %v785_v41, %v715_v28 }
 0x102   : > { %v791_v49 = vpack.c.bf16 %v787_v34, %v787_v34  ;;  %v1094_v1 = vmul.f32 %v1090_v53, %v715_v28  ;;  %v3629_v2 = vmul.f32 %v1395_v54, %v715_v28  ;;  %v1096_v14 = vpack.c.bf16 %v3625_v37, %v3625_v37 }
 0x103   : > { %v794_v61 = vunpack.c.l.bf16 %v790_v42  ;;  %v793_v62 = vpack.c.bf16 %v789_v52, %v789_v52  ;;  %v796_v0 = vunpack.c.l.bf16 %v792_v46  ;;  %v1097_v38 = vpack.c.bf16 %v3621_v29, %v3621_v29 }
 0x104   : > { %v795_v5 = vunpack.c.l.bf16 %v791_v49 }
 0x105   : > { %v797_v6 = vunpack.c.l.bf16 %v793_v62  ;;  %v798_v11 = vsub.f32 %v786_v15, %v794_v61  ;;  %v800_v13 = vsub.f32 %v788_v24, %v796_v0  ;;  %v1098_v15 = vpack.c.bf16 %v1094_v1, %v1094_v1 }
 0x106   : > { %v799_v10 = vsub.f32 %v787_v34, %v795_v5  ;;  %v1100_v24 = vunpack.c.l.bf16 %v1096_v14  ;;  %v1101_v42 = vunpack.c.l.bf16 %v1097_v38  ;;  %v1402_v62 = vpack.c.bf16 %v3623_v30, %v3623_v30 }
 0x107   : > { %v801_v12 = vsub.f32 %v789_v52, %v797_v6  ;;  %v1102_v25 = vunpack.c.l.bf16 %v1098_v15 }
 0x108   : > { %866 = vmatprep.mubr.f32.mxu0 %v799_v10  ;;  %v1104_v28 = vsub.f32 %v3625_v37, %v1100_v24  ;;  %v1095_v37 = vpack.c.bf16 %v3617_v18, %v3617_v18  ;;  %v1105_v49 = vsub.f32 %v3621_v29, %v1101_v42  ;;  %v1403_v29 = vpack.c.bf16 %v3629_v2, %v3629_v2 }
 0x109   : > { %936 = vmatprep.mubr.f32.mxu1 %v801_v12  ;;  %867 = vmatmul.mubr.f32.vlgmr.msra.gmra.mrb[2].mxu0 %v798_v11  ;;  %v1106_v34 = vsub.f32 %v1094_v1, %v1102_v25  ;;  %v1406_v1 = vunpack.c.l.bf16 %v1402_v62 }
 0x10a   : > { %937 = vmatmul.mubr.f32.vlgmr.msra.gmra.mrb[2].mxu1 %v800_v13  ;;  %2729 = vmatpush3.bf16.msra.mxu0 %v3357_v31  ;;  %v1099_v41 = vunpack.c.l.bf16 %v1095_v37  ;;  %v1407_v53 = vunpack.c.l.bf16 %v1403_v29 }
 0x10b   : > { %2761 = vmatpush3.bf16.msra.mxu1 %v3359_v32  ;;  %1006 = vmatprep.mubr.f32.mxu0 %v795_v5  ;;  %v1410_v5 = vsub.f32 %v3623_v30, %v1406_v1 }
 0x10c   : > { %1076 = vmatprep.mubr.f32.mxu1 %v797_v6  ;;  %2731 = vmatprep.subr.bf16.mxu0 %v3367_v35  ;;  %v1103_v46 = vsub.f32 %v3617_v18, %v1099_v41  ;;  %v1401_v18 = vpack.c.bf16 %v3627_v50, %v3627_v50 }
 0x10d   : > { %2763 = vmatprep.subr.bf16.mxu1 %v3369_v36 }
 0x10e   : > { %2733 = vmatpush3.bf16.msra.mxu0 %v3393_v43  ;;  %v1405_v52 = vunpack.c.l.bf16 %v1401_v18 }
 0x10f   : > { %2765 = vmatpush3.bf16.msra.mxu1 %v3395_v44  ;;  %2735 = vmatprep.subr.bf16.mxu0 %v3405_v47 }
 0x110   : > { %2767 = vmatprep.subr.bf16.mxu1 %v3407_v48  ;;  %v1409_v54 = vsub.f32 %v3627_v50, %v1405_v52  ;;  %v1400_v50 = vpack.c.bf16 %v3619_v23, %v3619_v23 }
 0x112   : > { %2737 = vmatpush3.bf16.msra.mxu0 %v3429_v55 }
 0x113   : > { %2769 = vmatpush3.bf16.msra.mxu1 %v3431_v56  ;;  %2739 = vmatprep.subr.bf16.mxu0 %v3441_v59 }
 0x114   : > { %2771 = vmatprep.subr.bf16.mxu1 %v3443_v60 }
 0x116   : > { %2741 = vmatpush3.bf16.msra.mxu0 %v3465_v3 }
 0x117   : > { %2773 = vmatpush3.bf16.msra.mxu1 %v3467_v4  ;;  %2743 = vmatprep.subr.bf16.mxu0 %v3477_v8 }
 0x118   : > { %2775 = vmatprep.subr.bf16.mxu1 %v3479_v9 }
 0x11a   : > { %2745 = vmatpush3.bf16.msra.mxu0 %v3501_v16 }
 0x11b   : > { %2777 = vmatpush3.bf16.msra.mxu1 %v3503_v17  ;;  %2747 = vmatprep.subr.bf16.mxu0 %v3510_v19 }
 0x11c   : > { %2779 = vmatprep.subr.bf16.mxu1 %v3512_v20 }
 0x11e   : > { %2749 = vmatpush3.bf16.msra.mxu0 %v3525_v26 }
 0x11f   : > { %2781 = vmatpush3.bf16.msra.mxu1 %v3527_v27  ;;  %2751 = vmatprep.subr.bf16.mxu0 %v3542_v33 }
 0x120   : > { %2783 = vmatprep.subr.bf16.mxu1 %v3553_v39 }
 0x122   : > { %2753 = vmatpush3.bf16.msra.mxu0 %v3555_v40 }
 0x123   : > { %2785 = vmatpush3.bf16.msra.mxu1 %v3564_v45  ;;  %2755 = vmatprep.subr.bf16.mxu0 %v3578_v51 }
 0x124   : > { %2787 = vmatprep.subr.bf16.mxu1 %v3589_v57 }
 0x126   : > { %2757 = vmatpush3.bf16.msra.mxu0 %v3591_v58 }
 0x127   : > { %2789 = vmatpush3.bf16.msra.mxu1 %v3600_v63  ;;  %2791 = vmatprep.subr.bf16.mxu0 %v3323_v21 }
 0x128   : > { %2823 = vmatprep.subr.bf16.mxu1 %v3325_v22 }
 0x129   : > { %1007 = vmatmul.mubr.f32.vlgmr.msra.gmra.mrb[4].mxu0 %v794_v61  ;;  %v1411_v61 = vsub.f32 %v3629_v2, %v1407_v53 }
 0x12a   : > { %1077 = vmatmul.mubr.f32.vlgmr.msra.gmra.mrb[4].mxu1 %v796_v0  ;;  %2793 = vmatpush3.bf16.msra.mxu0 %v3357_v31  ;;  %v1404_v0 = vunpack.c.l.bf16 %v1400_v50  ;;  %v1702_v50 = vlaneseq }
 0x12b   : > { %1171 = vmatprep.mubr.f32.mxu0 %v1104_v28  ;;  %2825 = vmatpush3.bf16.msra.mxu1 %v3359_v32 }
 0x12c   : > { %1241 = vmatprep.mubr.f32.mxu1 %v1106_v34  ;;  %2795 = vmatprep.subr.bf16.mxu0 %v3367_v35  ;;  %v1408_v2 = vsub.f32 %v3619_v23, %v1404_v0  ;;  %v1703_v62 = vshrl.u32 %v1702_v50, 7 }
 0x12d   : > { %2827 = vmatprep.subr.bf16.mxu1 %v3369_v36 }
 0x12e   : > { %2797 = vmatpush3.bf16.msra.mxu0 %v3393_v43 }
 0x12f   : > { %2829 = vmatpush3.bf16.msra.mxu1 %v3395_v44  ;;  %2799 = vmatprep.subr.bf16.mxu0 %v3405_v47 }
 0x130   : > { %2831 = vmatprep.subr.bf16.mxu1 %v3407_v48 }
 0x132   : > { %2801 = vmatpush3.bf16.msra.mxu0 %v3429_v55 }
 0x133   : > { %2833 = vmatpush3.bf16.msra.mxu1 %v3431_v56  ;;  %2803 = vmatprep.subr.bf16.mxu0 %v3441_v59 }
 0x134   : > { %2835 = vmatprep.subr.bf16.mxu1 %v3443_v60 }
 0x136   : > { %2805 = vmatpush3.bf16.msra.mxu0 %v3465_v3 }
 0x137   : > { %2837 = vmatpush3.bf16.msra.mxu1 %v3467_v4  ;;  %2807 = vmatprep.subr.bf16.mxu0 %v3477_v8 }
 0x138   : > { %2839 = vmatprep.subr.bf16.mxu1 %v3479_v9 }
 0x13a   : > { %2809 = vmatpush3.bf16.msra.mxu0 %v3501_v16 }
 0x13b   : > { %2841 = vmatpush3.bf16.msra.mxu1 %v3503_v17  ;;  %2811 = vmatprep.subr.bf16.mxu0 %v3510_v19 }
 0x13c   : > { %2843 = vmatprep.subr.bf16.mxu1 %v3512_v20 }
 0x13e   : > { %2813 = vmatpush3.bf16.msra.mxu0 %v3525_v26 }
 0x13f   : > { %2845 = vmatpush3.bf16.msra.mxu1 %v3527_v27  ;;  %2815 = vmatprep.subr.bf16.mxu0 %v3542_v33 }
 0x140   : > { %2847 = vmatprep.subr.bf16.mxu1 %v3553_v39 }
 0x142   : > { %2817 = vmatpush3.bf16.msra.mxu0 %v3555_v40 }
 0x143   : > { %2849 = vmatpush3.bf16.msra.mxu1 %v3564_v45  ;;  %2819 = vmatprep.subr.bf16.mxu0 %v3578_v51 }
 0x144   : > { %2851 = vmatprep.subr.bf16.mxu1 %v3589_v57 }
 0x146   : > { %2821 = vmatpush3.bf16.msra.mxu0 %v3591_v58 }
 0x147   : > { %2853 = vmatpush3.bf16.msra.mxu1 %v3600_v63  ;;  %2855 = vmatprep.subr.bf16.mxu0 %v3323_v21 }
 0x148   : > { %2887 = vmatprep.subr.bf16.mxu1 %v3325_v22 }
 0x149   : > { %1172 = vmatmul.mubr.f32.vlgmr.msra.gmra.mrb[6].mxu0 %v1103_v46 }
 0x14a   : > { %1242 = vmatmul.mubr.f32.vlgmr.msra.gmra.mrb[6].mxu1 %v1105_v49  ;;  %2857 = vmatpush3.bf16.msra.mxu0 %v3357_v31 }
 0x14b   : > { %1311 = vmatprep.mubr.f32.mxu0 %v1100_v24  ;;  %2889 = vmatpush3.bf16.msra.mxu1 %v3359_v32 }
 0x14c   : > { %1381 = vmatprep.mubr.f32.mxu1 %v1102_v25  ;;  %2859 = vmatprep.subr.bf16.mxu0 %v3367_v35 }
 0x14d   : > { %2891 = vmatprep.subr.bf16.mxu1 %v3369_v36 }
 0x14e   : > { %2861 = vmatpush3.bf16.msra.mxu0 %v3393_v43 }
 0x14f   : > { %2893 = vmatpush3.bf16.msra.mxu1 %v3395_v44  ;;  %2863 = vmatprep.subr.bf16.mxu0 %v3405_v47 }
 0x150   : > { %2895 = vmatprep.subr.bf16.mxu1 %v3407_v48 }
 0x152   : > { %2865 = vmatpush3.bf16.msra.mxu0 %v3429_v55 }
 0x153   : > { %2897 = vmatpush3.bf16.msra.mxu1 %v3431_v56  ;;  %2867 = vmatprep.subr.bf16.mxu0 %v3441_v59 }
 0x154   : > { %2899 = vmatprep.subr.bf16.mxu1 %v3443_v60 }
 0x156   : > { %2869 = vmatpush3.bf16.msra.mxu0 %v3465_v3 }
 0x157   : > { %2901 = vmatpush3.bf16.msra.mxu1 %v3467_v4  ;;  %2871 = vmatprep.subr.bf16.mxu0 %v3477_v8 }
 0x158   : > { %2903 = vmatprep.subr.bf16.mxu1 %v3479_v9 }
 0x15a   : > { %2873 = vmatpush3.bf16.msra.mxu0 %v3501_v16 }
 0x15b   : > { %2905 = vmatpush3.bf16.msra.mxu1 %v3503_v17  ;;  %2875 = vmatprep.subr.bf16.mxu0 %v3510_v19 }
 0x15c   : > { %2907 = vmatprep.subr.bf16.mxu1 %v3512_v20 }
 0x15e   : > { %2877 = vmatpush3.bf16.msra.mxu0 %v3525_v26 }
 0x15f   : > { %2909 = vmatpush3.bf16.msra.mxu1 %v3527_v27  ;;  %2879 = vmatprep.subr.bf16.mxu0 %v3542_v33 }
 0x160   : > { %2911 = vmatprep.subr.bf16.mxu1 %v3553_v39 }
 0x162   : > { %2881 = vmatpush3.bf16.msra.mxu0 %v3555_v40 }
 0x163   : > { %2913 = vmatpush3.bf16.msra.mxu1 %v3564_v45  ;;  %2883 = vmatprep.subr.bf16.mxu0 %v3578_v51 }
 0x164   : > { %2915 = vmatprep.subr.bf16.mxu1 %v3589_v57 }
 0x166   : > { %2885 = vmatpush3.bf16.msra.mxu0 %v3591_v58 }
 0x167   : > { %2917 = vmatpush3.bf16.msra.mxu1 %v3600_v63  ;;  %2919 = vmatprep.subr.bf16.mxu0 %v3323_v21 }
 0x168   : > { %2951 = vmatprep.subr.bf16.mxu1 %v3325_v22 }
 0x169   : > { %1312 = vmatmul.mubr.f32.vlgmr.msra.gmra.mrb[8].mxu0 %v1099_v41 }
 0x16a   : > { %1382 = vmatmul.mubr.f32.vlgmr.msra.gmra.mrb[8].mxu1 %v1101_v42  ;;  %2921 = vmatpush3.bf16.msra.mxu0 %v3357_v31 }
 0x16b   : > { %1476 = vmatprep.mubr.f32.mxu0 %v1409_v54  ;;  %2953 = vmatpush3.bf16.msra.mxu1 %v3359_v32 }
 0x16c   : > { %1546 = vmatprep.mubr.f32.mxu1 %v1411_v61  ;;  %2923 = vmatprep.subr.bf16.mxu0 %v3367_v35 }
 0x16d   : > { %2955 = vmatprep.subr.bf16.mxu1 %v3369_v36 }
 0x16e   : > { %2925 = vmatpush3.bf16.msra.mxu0 %v3393_v43 }
 0x16f   : > { %2957 = vmatpush3.bf16.msra.mxu1 %v3395_v44  ;;  %2927 = vmatprep.subr.bf16.mxu0 %v3405_v47 }
 0x170   : > { %2959 = vmatprep.subr.bf16.mxu1 %v3407_v48 }
 0x172   : > { %2929 = vmatpush3.bf16.msra.mxu0 %v3429_v55 }
 0x173   : > { %2961 = vmatpush3.bf16.msra.mxu1 %v3431_v56  ;;  %2931 = vmatprep.subr.bf16.mxu0 %v3441_v59 }
 0x174   : > { %2963 = vmatprep.subr.bf16.mxu1 %v3443_v60 }
 0x176   : > { %2933 = vmatpush3.bf16.msra.mxu0 %v3465_v3 }
 0x177   : > { %2965 = vmatpush3.bf16.msra.mxu1 %v3467_v4  ;;  %2935 = vmatprep.subr.bf16.mxu0 %v3477_v8 }
 0x178   : > { %2967 = vmatprep.subr.bf16.mxu1 %v3479_v9 }
 0x17a   : > { %2937 = vmatpush3.bf16.msra.mxu0 %v3501_v16 }
 0x17b   : > { %2969 = vmatpush3.bf16.msra.mxu1 %v3503_v17  ;;  %2939 = vmatprep.subr.bf16.mxu0 %v3510_v19 }
 0x17c   : > { %2971 = vmatprep.subr.bf16.mxu1 %v3512_v20 }
 0x17e   : > { %2941 = vmatpush3.bf16.msra.mxu0 %v3525_v26 }
 0x17f   : > { %2973 = vmatpush3.bf16.msra.mxu1 %v3527_v27  ;;  %2943 = vmatprep.subr.bf16.mxu0 %v3542_v33 }
 0x180   : > { %2975 = vmatprep.subr.bf16.mxu1 %v3553_v39 }
 0x182   : > { %2945 = vmatpush3.bf16.msra.mxu0 %v3555_v40 }
 0x183   : > { %2977 = vmatpush3.bf16.msra.mxu1 %v3564_v45  ;;  %2947 = vmatprep.subr.bf16.mxu0 %v3578_v51 }
 0x184   : > { %2979 = vmatprep.subr.bf16.mxu1 %v3589_v57 }
 0x186   : > { %2949 = vmatpush3.bf16.msra.mxu0 %v3591_v58 }
 0x187   : > { %2981 = vmatpush3.bf16.msra.mxu1 %v3600_v63  ;;  %2983 = vmatprep.subr.bf16.mxu0 %v3323_v21 }
 0x188   : > { %3015 = vmatprep.subr.bf16.mxu1 %v3325_v22 }
 0x189   : > { %1477 = vmatmul.mubr.f32.vlgmr.msra.gmra.mrb[10].mxu0 %v1408_v2 }
 0x18a   : > { %1547 = vmatmul.mubr.f32.vlgmr.msra.gmra.mrb[10].mxu1 %v1410_v5  ;;  %2985 = vmatpush3.bf16.msra.mxu0 %v3357_v31  ;;  %v1698_v5 = vld [vmem:[%s3899_s6] sm:$0x3] }
 0x18b   : > { %1616 = vmatprep.mubr.f32.mxu0 %v1405_v52  ;;  %3017 = vmatpush3.bf16.msra.mxu1 %v3359_v32 }
 0x18c   : > { %1686 = vmatprep.mubr.f32.mxu1 %v1407_v53  ;;  %2987 = vmatprep.subr.bf16.mxu0 %v3367_v35 }
 0x18d   : > { %3019 = vmatprep.subr.bf16.mxu1 %v3369_v36 }
 0x18e   : > { %2989 = vmatpush3.bf16.msra.mxu0 %v3393_v43 }
 0x18f   : > { %3021 = vmatpush3.bf16.msra.mxu1 %v3395_v44  ;;  %2991 = vmatprep.subr.bf16.mxu0 %v3405_v47 }
 0x190   : > { %3023 = vmatprep.subr.bf16.mxu1 %v3407_v48 }
 0x192   : > { %2993 = vmatpush3.bf16.msra.mxu0 %v3429_v55 }
 0x193   : > { %3025 = vmatpush3.bf16.msra.mxu1 %v3431_v56  ;;  %2995 = vmatprep.subr.bf16.mxu0 %v3441_v59 }
 0x194   : > { %3027 = vmatprep.subr.bf16.mxu1 %v3443_v60 }
 0x196   : > { %2997 = vmatpush3.bf16.msra.mxu0 %v3465_v3 }
 0x197   : > { %3029 = vmatpush3.bf16.msra.mxu1 %v3467_v4  ;;  %2999 = vmatprep.subr.bf16.mxu0 %v3477_v8 }
 0x198   : > { %3031 = vmatprep.subr.bf16.mxu1 %v3479_v9 }
 0x19a   : > { %3001 = vmatpush3.bf16.msra.mxu0 %v3501_v16 }
 0x19b   : > { %3033 = vmatpush3.bf16.msra.mxu1 %v3503_v17  ;;  %3003 = vmatprep.subr.bf16.mxu0 %v3510_v19 }
 0x19c   : > { %3035 = vmatprep.subr.bf16.mxu1 %v3512_v20 }
 0x19e   : > { %3005 = vmatpush3.bf16.msra.mxu0 %v3525_v26 }
 0x19f   : > { %3037 = vmatpush3.bf16.msra.mxu1 %v3527_v27  ;;  %3007 = vmatprep.subr.bf16.mxu0 %v3542_v33 }
 0x1a0   : > { %3039 = vmatprep.subr.bf16.mxu1 %v3553_v39 }
 0x1a2   : > { %3009 = vmatpush3.bf16.msra.mxu0 %v3555_v40 }
 0x1a3   : > { %3041 = vmatpush3.bf16.msra.mxu1 %v3564_v45  ;;  %3011 = vmatprep.subr.bf16.mxu0 %v3578_v51 }
 0x1a4   : > { %3043 = vmatprep.subr.bf16.mxu1 %v3589_v57 }
 0x1a6   : > { %3013 = vmatpush3.bf16.msra.mxu0 %v3591_v58 }
 0x1a7   : > { %3045 = vmatpush3.bf16.msra.mxu1 %v3600_v63  ;;  %2626 = vmatprep.subr.mxu0 %v3170_v7 }
 0x1a8   : > { %2631 = vmatprep.subr.mxu1 %v3170_v7 }
 0x1a9   : > { %1617 = vmatmul.mubr.f32.vlgmr.msra.gmra.mrb[12].mxu0 %v1404_v0  ;;  %v1704_v0 = vsub.s32 0, %v1703_v62 }
 0x1aa   : > { %1687 = vmatmul.mubr.f32.vlgmr.msra.gmra.mrb[12].mxu1 %v1406_v1  ;;  %2628 = vmatprep.mubr.msk.f32.mxu0 %vm3171_vm1, %v3170_v7  ;;  %v1714_v1 = vsub.s32 1, %v1703_v62 }
 0x1ab   : > { %2633 = vmatprep.mubr.msk.f32.mxu1 %vm3171_vm1, %v3170_v7 }
 0x1dc   : > { %v2230_v21 = vpop.f32.mrb[2].mxu0 }
 0x1dd   : > { %v2265_v22 = vpop.f32.mrb[2].mxu1  ;;  %v2231_v31 = vpop.f32.mrb[3].mxu0 }
 0x1de   : > { %v2232_v32 = vadd.f32 %v2231_v31, %v2230_v21  ;;  %v2266_v35 = vpop.f32.mrb[3].mxu1 }
 0x1df   : > { %v2267_v36 = vadd.f32 %v2266_v35, %v2265_v22  ;;  %v1699_v22 = vld [vmem:[%s3900_s7] sm:$0x3]  ;;  %v1715_v35 = vrot.slane %v1698_v5, %v1714_v1 }
 0x1e1   : > { %v939_v43 = vadd.f32 %v2267_v36, %v2232_v32  ;;  %v1705_v32 = vrot.slane %v1698_v5, %v1704_v0 }
 0x1fc   : > { %v2300_v44 = vpop.f32.mrb[4].mxu0 }
 0x1fd   : > { %v2335_v47 = vpop.f32.mrb[4].mxu1  ;;  %v2301_v48 = vpop.f32.mrb[5].mxu0 }
 0x1fe   : > { %v2302_v55 = vadd.f32 %v2301_v48, %v2300_v44  ;;  %v2336_v56 = vpop.f32.mrb[5].mxu1  ;;  %v1720_v44 = vrot.slane %v1699_v22, %v1714_v1 }
 0x1ff   : > { %v2337_v59 = vadd.f32 %v2336_v56, %v2335_v47 }
 0x200   : > { %v1009_v60 = vadd.f32 %v2302_v55, %v939_v43  ;;  %v1710_v43 = vrot.slane %v1699_v22, %v1704_v0 }
 0x202   : > { %v1079_v3 = vadd.f32 %v2337_v59, %v1009_v60 }
 0x204   : > { %v1082_v26 = vmul.f32 0.5, %v1079_v3 }
 0x206   : > { %3094 = vtanh.f32 %v1082_v26 }
 0x210   : > { %v3095_v23 = vpop.eup %3094 }
 0x211   : > { %v1084_v30 = vadd.f32 1.0, %v3095_v23 }
 0x213   : > { %v1085_v10 = vmul.f32 0.5, %v1084_v30 }
 0x215   : > { %v1086_v13 = vmul.f32 %v1085_v10, %v1079_v3 }
 0x21c   : > { %v2370_v4 = vpop.f32.mrb[6].mxu0 }
 0x21d   : > { %v2405_v8 = vpop.f32.mrb[6].mxu1  ;;  %v2371_v9 = vpop.f32.mrb[7].mxu0 }
 0x21e   : > { %v2372_v16 = vadd.f32 %v2371_v9, %v2370_v4  ;;  %v2406_v17 = vpop.f32.mrb[7].mxu1 }
 0x21f   : > { %v2407_v19 = vadd.f32 %v2406_v17, %v2405_v8 }
 0x221   : > { %v1244_v20 = vadd.f32 %v2407_v19, %v2372_v16 }
 0x23c   : > { %v2440_v27 = vpop.f32.mrb[8].mxu0 }
 0x23d   : > { %v2475_v33 = vpop.f32.mrb[8].mxu1  ;;  %v2441_v39 = vpop.f32.mrb[9].mxu0 }
 0x23e   : > { %v2442_v40 = vadd.f32 %v2441_v39, %v2440_v27  ;;  %v2476_v45 = vpop.f32.mrb[9].mxu1  ;;  %v1701_v27 = vld [vmem:[%s3902_s9] sm:$0xf] }
 0x23f   : > { %v2477_v51 = vadd.f32 %v2476_v45, %v2475_v33  ;;  %v3172_v33 = vmov 0  }
 0x240   : > { %v1314_v57 = vadd.f32 %v2442_v40, %v1244_v20  ;;  %3092 = vset.pattern.permute.xlu1 %v3172_v33  ;;  %3093 = vset.pattern.permute.xlu0 %v3172_v33 }
 0x242   : > { %v1384_v58 = vadd.f32 %v2477_v51, %v1314_v57 }
 0x244   : > { %v1387_v63 = vmul.f32 0.5, %v1384_v58 }
 0x246   : > { %3096 = vtanh.f32 %v1387_v63 }
 0x250   : > { %v3097_v6 = vpop.eup %3096 }
 0x251   : > { %v1389_v11 = vadd.f32 1.0, %v3097_v6 }
 0x253   : > { %v1390_v12 = vmul.f32 0.5, %v1389_v11 }
 0x255   : > { %v1391_v14 = vmul.f32 %v1390_v12, %v1384_v58  ;;  %v1700_v58 = vld [vmem:[%s3901_s8] sm:$0xf] }
 0x256   : > { %v1821_v30 = vpack.c.bf16 %v1700_v58, %v1700_v58 }
 0x257   : > { %v3816_v15 = vmul.f32 %v1391_v14, %v1086_v13 }
 0x258   : > { %v1822_v11 = vunpack.c.l.bf16 %v1821_v30 }
 0x25a   : > { %v1825_v14 = vsub.f32 %v1700_v58, %v1822_v11 }
 0x25c   : > { %v2510_v24 = vpop.f32.mrb[10].mxu0 }
 0x25d   : > { %v2545_v25 = vpop.f32.mrb[10].mxu1  ;;  %v2511_v28 = vpop.f32.mrb[11].mxu0 }
 0x25e   : > { %v2512_v34 = vadd.f32 %v2511_v28, %v2510_v24  ;;  %v2546_v37 = vpop.f32.mrb[11].mxu1 }
 0x25f   : > { %v2547_v38 = vadd.f32 %v2546_v37, %v2545_v25 }
 0x261   : > { %v1549_v41 = vadd.f32 %v2547_v38, %v2512_v34 }
 0x27c   : > { %v2580_v42 = vpop.f32.mrb[12].mxu0 }
 0x27d   : > { %v2615_v46 = vpop.f32.mrb[12].mxu1  ;;  %v2581_v49 = vpop.f32.mrb[13].mxu0 }
 0x27e   : > { %v2582_v18 = vadd.f32 %v2581_v49, %v2580_v42  ;;  %v2616_v29 = vpop.f32.mrb[13].mxu1 }
 0x27f   : > { %v2617_v52 = vadd.f32 %v2616_v29, %v2615_v46 }
 0x280   : > { %v1619_v53 = vadd.f32 %v2582_v18, %v1549_v41 }
 0x282   : > { %v1689_v54 = vadd.f32 %v2617_v52, %v1619_v53 }
 0x284   : > { %v1692_v61 = vmul.f32 0.5, %v1689_v54 }
 0x286   : > { %3098 = vtanh.f32 %v1692_v61 }
 0x290   : > { %v3099_v2 = vpop.eup %3098 }
 0x291   : > { %v1694_v21 = vadd.f32 1.0, %v3099_v2 }
 0x293   : > { %v1695_v31 = vmul.f32 0.5, %v1694_v21 }
 0x295   : > { %v1696_v36 = vmul.f32 %v1695_v31, %v1689_v54 }
 0x297   : > { %v1706_v47 = vmul.f32 %v1705_v32, %v1696_v36  ;;  %v1716_v48 = vmul.f32 %v1715_v35, %v1696_v36 }
 0x299   : > { %v1711_v55 = vadd.f32 %v1710_v43, %v1706_v47  ;;  %v1721_v56 = vadd.f32 %v1720_v44, %v1716_v48 }
 0x29b   : > { %2627 = vmatpush3.xpose.msk.msra.mxu0 %vm1722_vm2, %v1721_v56  ;;  %v1810_v59 = vmul.f32 %v1721_v56, %v1711_v55 }
 0x29c   : > { %2636 = vmatprep.subr.mxu0 %v3170_v7 }
 0x29d   : > { %v1811_v9 = vsel %vm1722_vm2, %v1810_v59, 0.0 }
 0x29e   : > { %2629 = vmatmul.mubr.msk.f32.vlgmr.msra.gmra.mrb[14].mxu0 %vm1722_vm2, %v1711_v55 }
 0x29f   : > { %2638 = vmatprep.mubr.msk.f32.mxu0 %vm3171_vm1, %v3170_v7 }
 0x371   : > { %v1795_v60 = vpop.f32.mrb[14].mxu0 }
 0x372   : > { %v1799_v3 = vmul.f32 0.17677669, %v1795_v60  ;;  %v2630_v4 = vpop.f32.mrb[15].mxu0 }
 0x374   : > { %v1801_v8 = vsel %vm1800_vm3, %v1799_v3, -inf }
 0x375   : > { %1802 = vmax.xlane.f32.xlu0 %v1801_v8 }
 0x379   : > { %1812 = vadd.xlane.f32.xlu0 %v1811_v9 }
 0x402   : > { %v1803_v16 = vpop.xlane.xlu0 %1802 }
 0x403   : > { %v1804_v17 = vsub.f32 %v1799_v3, %v1803_v16 }
 0x405   : > { %v1805_v19 = vmul.f32 1.442695, %v1804_v17 }
 0x406   : > { %v1813_v39 = vpop.xlane.xlu0 %1812 }
 0x407   : > { %3100 = vpow2.f32 %v1805_v19  ;;  %v1814_v40 = vmul.f32 0.17677669, %v1813_v39 }
 0x409   : > { %v1815_v45 = vsub.f32 %v1814_v40, %v1803_v16 }
 0x40b   : > { %v1816_v51 = vmul.f32 1.442695, %v1815_v45 }
 0x40d   : > { %3102 = vpow2.f32 %v1816_v51 }
 0x411   : > { %v3101_v20 = vpop.eup %3100 }
 0x412   : > { %v1807_v26 = vsel %vm1800_vm3, %v3101_v20, 0.0 }
 0x413   : > { %1808 = vadd.xlane.f32.xlu1 %v1807_v26 }
 0x417   : > { %v3103_v63 = vpop.eup %3102 }
 0x424   : > { %2052 = vperm.xlu1 %3092, %v1701_v27  }
 0x4a0   : > { %v1809_v57 = vpop.xlane.xlu1 %1808 }
 0x4a1   : > { %3104 = vrcp.f32 %v1809_v57 }
 0x4a4   : > { %v2053_v41 = vpop.permute.xlu1 %2052 }
 0x4ab   : > { %v3105_v23 = vpop.eup %3104 }
 0x4ac   : > { %v1819_v6 = vmul.f32 %v3105_v23, %v3103_v63 }
 0x4ae   : > { %v1820_v10 = vmul.f32 %v1819_v6, %v3816_v15 }
 0x4b0   : > { %v1823_v12 = vpack.c.bf16 %v1820_v10, %v1820_v10 }
 0x4b2   : > { %v1824_v13 = vunpack.c.l.bf16 %v1823_v12 }
 0x4b4   : > { %2632 = vmatpush3.xpose.msk.msra.mxu1 %vm1722_vm2, %v1824_v13  ;;  %2637 = vmatpush3.xpose.msk.msra.mxu0 %vm1722_vm2, %v1824_v13  ;;  %v1975_v24 = vsub.f32 %v1820_v10, %v1824_v13 }
 0x4b5   : > { %2641 = vmatprep.subr.mxu1 %v3170_v7 }
 0x4b7   : > { %2634 = vmatmul.mubr.msk.f32.vlgmr.msra.gmra.mrb[14].mxu1 %vm1722_vm2, %v1825_v14  ;;  %2639 = vmatmul.mubr.msk.f32.vlgmr.msra.gmra.mrb[16].mxu0 %vm1722_vm2, %v1822_v11 }
 0x4b8   : > { %2642 = vmatpush3.xpose.msk.msra.mxu1 %vm1722_vm2, %v1975_v24  ;;  %2643 = vmatprep.mubr.msk.f32.mxu1 %vm3171_vm1, %v3170_v7 }
 0x4bb   : > { %2644 = vmatmul.mubr.msk.f32.vlgmr.msra.gmra.mrb[16].mxu1 %vm1722_vm2, %v1822_v11 }
 0x58a   : > { %v1898_v15 = vpop.f32.mrb[14].mxu1  ;;  %v1971_v25 = vpop.f32.mrb[16].mxu0 }
 0x58b   : > { %v2635_v28 = vpop.f32.mrb[15].mxu1  ;;  %v1972_v34 = vadd.f32 %v1971_v25, %v1898_v15  ;;  %v2640_v37 = vpop.f32.mrb[17].mxu0 }
 0x58e   : > { %v2045_v38 = vpop.f32.mrb[16].mxu1 }
 0x58f   : > { %v2049_v42 = vadd.f32 %v2045_v38, %v1972_v34  ;;  %v2645_v46 = vpop.f32.mrb[17].mxu1 }
 0x591   : > { %v2055_v49 = vadd.f32 %v2053_v41, %v2049_v42 }
 0x593   : > { %2057 = vst.msk [vmem:[%s395_s29] sm:$0xf] %vm2056_vm4, %v2055_v49 }
 0x594   : > { %3119 = shalt.err (!%p3116_p3)
}
 0x595   : > { %s3120_s25 = scalar_lea.hbm %s3851_s18, 64  ;;  %s3124_s28 = scalar_lea.hbm %s3903_s10, 128 }
 0x596   : > { %p3121_p4 = scmp.ne.s32.totalorder %s3851_s18, %s3120_s25  ;;  %p3125_p9 = scmp.lt.u32.totalorder %s3851_s18, %s3903_s10 }
 0x597   : > { %p3126_p10 = scmp.lt.u32.totalorder %s3124_s28, %s3120_s25  ;;  %p3128_p12 = scmp.lt.u32.totalorder %s3120_s25, %s3851_s18 }
 0x598   : > { %p3122_p7 = pnand %p3121_p4, %p3267_p5 }
 0x599   : > { %p3127_p11 = por %p3126_p10, %p3125_p9 }
 0x59a   : > { %p3123_p8 = pneg %p3122_p7 }
 0x59b   : > { %p3129_p13 = por %p3128_p12, %p3127_p11 }
 0x59d   : > { %p3130_p0 = pnand %p3129_p13, %p3123_p8 }
 0x59f   : > { %3133 = shalt.err (!%p3130_p0)
}
 0x5a0   : > { %3050 = dma.vmem_to_hbm [thread:$0]  (%p3267_p5), %s3853_s12, 64, %s3851_s18, %s2059_s0  }
 0x5a1 PF: > { %p3056_p1 = scmp.ge.s32.totalorder %s3168_s16, 2  ;;  %s2084_s11 = sand.u32 1, %s3156_s13  }
 0x5a2   : > { %s2085_s20 = scalar_lea.sflag [#allocation3], %s2084_s11 }
 0x5a3   : > { %p3053_p2 = pnand %p3056_p1, %p3271_p6 }
 0x5a5   : > { %3151 = dma.done.wait (!%p3053_p2), %s2085_s20, 64  }
 0x5a6   : > { %3153 = vsyncadd (!%p3053_p2), %s2085_s20, 4294967232  ;;  %p20_p3 = scmp.ge.s32.totalorder %s3254_s19, 4   ;;  %s3910_s13 = smov %s3160_s14 }
 0x5a7   : > { %s3911_s14 = smov %s3164_s15  ;;  %s3912_s15 = smov %s3265_s22 }
 0x5a8   : > { %s3913_s16 = smov %s3254_s19  ;;  %22 = sbr.rel (!%p20_p3) target bundleno = 6 (0x6), region = 104 }
 0x5af   :  { %2090 = vsyncpa [#allocation3], 1 }
 0x5b0   :  { %2092 = vsyncpa [#allocation3 + $0x1], 1 }

</bundles_post_ra>
